<compile_context>
chip_gen: v6e
topology: v6e:2x2x1
jax: 0.10.0
libtpu: 0.0.40
codegen_flags: <defaults>
</compile_context>

<pallas_src>
import functools

import numpy as np
import jax
import jax.numpy as jnp
from jax.experimental import pallas as pl
from jax.experimental.pallas import tpu as pltpu


def _forecaster_kernel(x_ref, we_ref, wband_ref, bband_ref, wfc_ref, bfc_ref,
                       out_ref, *, num_layers, compute_dtype):
    # embedding: (TB, Fin) @ (Fin, L*E) -> (TB, L*E), f32 accumulation
    h = jnp.dot(x_ref[...], we_ref[...], preferred_element_type=jnp.float32)

    # conv stack: each Conv1d layer is ONE (TB, L*E) @ (L*E, L*E) banded matmul.
    # TODO(synk): for deep stacks (num_layers >> 4) switch this Python unroll
    # to lax.fori_loop over the stacked weight to bound vreg live ranges.
    for layer in range(num_layers):
        h = jnp.dot(h.astype(compute_dtype), wband_ref[layer],
                    preferred_element_type=jnp.float32) + bband_ref[layer]

    # fc: (TB, L*E) @ (L*E, out_pad) — out_pad is a multiple of 128 (lane dense)
    out = jnp.dot(h.astype(compute_dtype), wfc_ref[...],
                  preferred_element_type=jnp.float32) + bfc_ref[...]
    out_ref[...] = out.astype(out_ref.dtype)


def cnn_forecaster_forward(x, kernel_params, *, input_shape, output_shape,
                           num_layers, embedding_size, block_b=512):
    in0, in1 = input_shape
    B = x.shape[0]
    L, E = in1, embedding_size
    LE = L * E
    fin = in0 * in1
    out_dim = output_shape[0] * output_shape[1]

    we_k, wband_k, bband_k, wfc_k, bfc_k = kernel_params
    out_pad = wfc_k.shape[1]                 # fc columns, padded to 128 lanes
    cdt = we_k.dtype                         # compute dtype (bf16 or f32)

    x_flat = x.reshape(B, fin).astype(cdt)   # torch: x.flatten(start_dim=1)

    TB = min(B, block_b)                     # batch tile (parallel grid axis)
    grid = (pl.cdiv(B, TB),)

    # VMEM budget (sized for the v7x 64 MiB physical / 32 MiB default scope)
    itemsize = jnp.dtype(cdt).itemsize
    weight_bytes = sum(int(np.prod(a.shape)) * a.dtype.itemsize
                       for a in (we_k, wband_k, bband_k, wfc_k, bfc_k))
    io_tile_bytes = 2 * TB * fin * itemsize + 2 * TB * out_pad * 4
    scratch_bytes = 4 * TB * LE * 4
    vmem_limit = min(2 * (weight_bytes + io_tile_bytes + scratch_bytes)
                     + (8 << 20), 48 << 20)

    flops = 2 * B * (fin * LE + num_layers * LE * LE + LE * out_pad)
    bytes_accessed = B * fin * itemsize + weight_bytes + B * out_pad * 4

    kernel = functools.partial(_forecaster_kernel, num_layers=num_layers,
                               compute_dtype=cdt)

    out = pl.pallas_call(
        kernel,
        out_shape=jax.ShapeDtypeStruct((B, out_pad), jnp.float32),
        grid=grid,
        in_specs=[
            pl.BlockSpec((TB, fin), lambda i: (i, 0)),          # batch-tiled
            pl.BlockSpec(we_k.shape, lambda i: (0, 0)),         # resident
            pl.BlockSpec(wband_k.shape, lambda i: (0, 0, 0)),   # resident
            pl.BlockSpec(bband_k.shape, lambda i: (0, 0, 0)),   # resident
            pl.BlockSpec(wfc_k.shape, lambda i: (0, 0)),        # resident
            pl.BlockSpec(bfc_k.shape, lambda i: (0, 0)),        # resident
        ],
        out_specs=pl.BlockSpec((TB, out_pad), lambda i: (i, 0)),
        compiler_params=pltpu.CompilerParams(
            dimension_semantics=("parallel",),
            vmem_limit_bytes=int(vmem_limit),
        ),
        cost_estimate=pl.CostEstimate(flops=int(flops), transcendentals=0,
                                      bytes_accessed=int(bytes_accessed)),
    )(x_flat, we_k, wband_k, bband_k, wfc_k, bfc_k)

    return out[:, :out_dim]                  # drop the lane padding


def init_params(key, input_shape, output_shape, num_layers, embedding_size,
                compute_dtype=jnp.bfloat16):
    """Deterministic synthetic params (torch layout) + kernel-layout views."""
    in0, in1 = input_shape
    L, E = in1, embedding_size
    LE = L * E
    fin = in0 * in1
    out_dim = output_shape[0] * output_shape[1]
    out_pad = ((out_dim + 127) // 128) * 128
    k0, k1, k2, k3, k4 = jax.random.split(key, 5)

    # torch-layout parameters
    we = jax.random.normal(k0, (LE, fin), jnp.float32) / np.sqrt(fin)
    conv_w = jax.random.normal(k1, (num_layers, E, E, 3), jnp.float32) / np.sqrt(3 * E)
    conv_b = jax.random.normal(k2, (num_layers, E), jnp.float32) * 0.1
    fc_w = jax.random.normal(k3, (out_dim, LE), jnp.float32) / np.sqrt(LE)
    fc_b = jax.random.normal(k4, (out_dim,), jnp.float32) * 0.1
    torch_params = (we, conv_w, conv_b, fc_w, fc_b)

    # --- kernel layout (host-side glue only) ---------------------------------
    # embedding columns: torch view(B,E,L) means col = e*L + l; kernel wants
    # col = l*E + e (channels-last within position).
    we_k = np.asarray(we).T.reshape(fin, E, L).transpose(0, 2, 1).reshape(fin, LE)

    # banded conv weight:
    #   out[:, l*E + eo] = sum_{ei,k} conv_w[eo, ei, k] * h[:, (l+k-1)*E + ei]
    # with zero padding for l+k-1 outside [0, L).
    wk = np.asarray(conv_w).transpose(0, 3, 2, 1)       # (nl, 3, E_in, E_out)
    wband = np.zeros((num_layers, LE, LE), np.float32)
    for l in range(L):
        for k in range(3):
            src = l + k - 1
            if 0 <= src < L:
                wband[:, src * E:(src + 1) * E, l * E:(l + 1) * E] = wk[:, k]
    bband = np.tile(np.asarray(conv_b), (1, L)).reshape(num_layers, 1, LE)

    # fc: torch flatten gives col = e*L + l; permute rows to l*E + e, then
    # lane-pad the output dimension to a multiple of 128 (unmasked stores).
    wfc = np.asarray(fc_w).T.reshape(E, L, out_dim).transpose(1, 0, 2).reshape(LE, out_dim)
    wfc_pad = np.zeros((LE, out_pad), np.float32)
    wfc_pad[:, :out_dim] = wfc
    bfc_pad = np.zeros((1, out_pad), np.float32)
    bfc_pad[0, :out_dim] = np.asarray(fc_b)

    cdt = jnp.dtype(compute_dtype)
    kernel_params = (
        jnp.asarray(we_k, cdt),
        jnp.asarray(wband, cdt),
        jnp.asarray(bband, jnp.float32),     # biases stay f32 (added to f32 acc)
        jnp.asarray(wfc_pad, cdt),
        jnp.asarray(bfc_pad, jnp.float32),
    )
    return torch_params, kernel_params


def reference_forward(x, torch_params, *, input_shape, embedding_size, num_layers):
    """Pure-JAX replica of the PyTorch forward (NCL conv) for verification."""
    we, conv_w, conv_b, fc_w, fc_b = torch_params
    B = x.shape[0]
    L, E = input_shape[1], embedding_size
    xf = x.reshape(B, -1)
    emb = xf @ we.T                                   # (B, L*E)
    h = emb.reshape(B, E, L)                          # torch .view(B, E, L)
    for i in range(num_layers):
        hp = jnp.pad(h, ((0, 0), (0, 0), (1, 1)))     # padding=1
        taps = jnp.stack([hp[:, :, k:k + L] for k in range(3)], axis=-1)  # (B,E,L,3)
        h = jnp.einsum('oik,bilk->bol', conv_w[i], taps) + conv_b[i][None, :, None]
    flat = h.reshape(B, E * L)
    return flat @ fc_w.T + fc_b[None, :]


if __name__ == "__main__":
    input_shape = (4, 16)     # (n_series, seq_len)
    output_shape = (4, 16)
    num_layers = 2
    embedding_size = 32
    batch = 2

    key = jax.random.PRNGKey(0)
    kx, kp = jax.random.split(key)
    x = jax.random.normal(kx, (batch,) + input_shape, jnp.float32)  # (2, 4, 16)

    # --- f32 mode: tight check of the banded-weight restructuring ------------
    torch_params, kparams_f32 = init_params(
        kp, input_shape, output_shape, num_layers, embedding_size,
        compute_dtype=jnp.float32)
    out_f32 = jax.block_until_ready(cnn_forecaster_forward(
        x, kparams_f32, input_shape=input_shape, output_shape=output_shape,
        num_layers=num_layers, embedding_size=embedding_size))

    ref = jax.block_until_ready(reference_forward(
        x, torch_params, input_shape=input_shape,
        embedding_size=embedding_size, num_layers=num_layers))

    np.testing.assert_allclose(np.asarray(out_f32), np.asarray(ref),
                               rtol=1e-4, atol=1e-4)

    # --- bf16 mode: MXU-native dtype on v6e/v7x (f32 accumulation) -----------
    _, kparams_bf16 = init_params(
        kp, input_shape, output_shape, num_layers, embedding_size,
        compute_dtype=jnp.bfloat16)
    out_bf16 = jax.block_until_ready(cnn_forecaster_forward(
        x, kparams_bf16, input_shape=input_shape, output_shape=output_shape,
        num_layers=num_layers, embedding_size=embedding_size))
    np.testing.assert_allclose(np.asarray(out_bf16), np.asarray(ref),
                               rtol=5e-2, atol=5e-2)

    print("KERNEL_OK")
</pallas_src>

<mosaic_0001>
module attributes {stable_mosaic.version = 11 : i64} {
  func.func @_forecaster_kernel(%arg0: i32, %arg1: memref<2x64xf32, #tpu.memory_space<vmem>>, %arg2: memref<64x512xf32, #tpu.memory_space<vmem>>, %arg3: memref<2x512x512xf32, #tpu.memory_space<vmem>>, %arg4: memref<2x1x512xf32, #tpu.memory_space<vmem>>, %arg5: memref<512x128xf32, #tpu.memory_space<vmem>>, %arg6: memref<1x128xf32, #tpu.memory_space<vmem>>, %arg7: memref<2x128xf32, #tpu.memory_space<vmem>>) attributes {dimension_semantics = [#tpu.dimension_semantics<parallel>], iteration_bounds = array<i64: 1>, scalar_prefetch = 0 : i64, scratch_operands = 0 : i64, tpu.core_type = #tpu.core_type<tc>, window_params = [{transform_indices = @transform_0, window_bounds = array<i64: 2, 64>}, {pipeline_mode = #tpu.pipeline_mode<synchronous>, transform_indices = @transform_1, window_bounds = array<i64: 64, 512>}, {pipeline_mode = #tpu.pipeline_mode<synchronous>, transform_indices = @transform_2, window_bounds = array<i64: 2, 512, 512>}, {pipeline_mode = #tpu.pipeline_mode<synchronous>, transform_indices = @transform_3, window_bounds = array<i64: 2, 1, 512>}, {pipeline_mode = #tpu.pipeline_mode<synchronous>, transform_indices = @transform_4, window_bounds = array<i64: 512, 128>}, {pipeline_mode = #tpu.pipeline_mode<synchronous>, transform_indices = @transform_5, window_bounds = array<i64: 1, 128>}, {transform_indices = @transform_6, window_bounds = array<i64: 2, 128>}]} {
    %c0 = arith.constant 0 : index
    %c0_0 = arith.constant 0 : index
    %0 = vector.load %arg1[%c0, %c0_0] : memref<2x64xf32, #tpu.memory_space<vmem>>, vector<2x64xf32>
    %c0_1 = arith.constant 0 : index
    %c0_2 = arith.constant 0 : index
    %1 = vector.load %arg2[%c0_1, %c0_2] : memref<64x512xf32, #tpu.memory_space<vmem>>, vector<64x512xf32>
    %cst = arith.constant dense<0.000000e+00> : vector<2x512xf32>
    %2 = tpu.matmul %0, %1, %cst {dimension_numbers = #tpu.dot_dimension_numbers<[1], [0], [0], [1], [0, 0, 1, 1], [], []>} : vector<2x64xf32>, vector<64x512xf32>, vector<2x512xf32> -> vector<2x512xf32>
    %c0_3 = arith.constant 0 : index
    %c0_4 = arith.constant 0 : index
    %c0_5 = arith.constant 0 : index
    %3 = vector.load %arg3[%c0_3, %c0_4, %c0_5] : memref<2x512x512xf32, #tpu.memory_space<vmem>>, vector<1x512x512xf32>
    %4 = vector.shape_cast %3 : vector<1x512x512xf32> to vector<512x512xf32>
    %cst_6 = arith.constant dense<0.000000e+00> : vector<2x512xf32>
    %5 = tpu.matmul %2, %4, %cst_6 {dimension_numbers = #tpu.dot_dimension_numbers<[1], [0], [0], [1], [0, 0, 1, 1], [], []>} : vector<2x512xf32>, vector<512x512xf32>, vector<2x512xf32> -> vector<2x512xf32>
    %c0_7 = arith.constant 0 : index
    %c0_8 = arith.constant 0 : index
    %c0_9 = arith.constant 0 : index
    %6 = vector.load %arg4[%c0_7, %c0_8, %c0_9] : memref<2x1x512xf32, #tpu.memory_space<vmem>>, vector<1x1x512xf32>
    %7 = vector.shape_cast %6 : vector<1x1x512xf32> to vector<1x512xf32>
    %8 = vector.broadcast %7 : vector<1x512xf32> to vector<2x512xf32>
    %9 = arith.addf %5, %8 : vector<2x512xf32>
    %c1 = arith.constant 1 : index
    %c0_10 = arith.constant 0 : index
    %c0_11 = arith.constant 0 : index
    %10 = vector.load %arg3[%c1, %c0_10, %c0_11] : memref<2x512x512xf32, #tpu.memory_space<vmem>>, vector<1x512x512xf32>
    %11 = vector.shape_cast %10 : vector<1x512x512xf32> to vector<512x512xf32>
    %cst_12 = arith.constant dense<0.000000e+00> : vector<2x512xf32>
    %12 = tpu.matmul %9, %11, %cst_12 {dimension_numbers = #tpu.dot_dimension_numbers<[1], [0], [0], [1], [0, 0, 1, 1], [], []>} : vector<2x512xf32>, vector<512x512xf32>, vector<2x512xf32> -> vector<2x512xf32>
    %c1_13 = arith.constant 1 : index
    %c0_14 = arith.constant 0 : index
    %c0_15 = arith.constant 0 : index
    %13 = vector.load %arg4[%c1_13, %c0_14, %c0_15] : memref<2x1x512xf32, #tpu.memory_space<vmem>>, vector<1x1x512xf32>
    %14 = vector.shape_cast %13 : vector<1x1x512xf32> to vector<1x512xf32>
    %15 = vector.broadcast %14 : vector<1x512xf32> to vector<2x512xf32>
    %16 = arith.addf %12, %15 : vector<2x512xf32>
    %c0_16 = arith.constant 0 : index
    %c0_17 = arith.constant 0 : index
    %17 = vector.load %arg5[%c0_16, %c0_17] : memref<512x128xf32, #tpu.memory_space<vmem>>, vector<512x128xf32>
    %cst_18 = arith.constant dense<0.000000e+00> : vector<2x128xf32>
    %18 = tpu.matmul %16, %17, %cst_18 {dimension_numbers = #tpu.dot_dimension_numbers<[1], [0], [0], [1], [0, 0, 1, 1], [], []>} : vector<2x512xf32>, vector<512x128xf32>, vector<2x128xf32> -> vector<2x128xf32>
    %c0_19 = arith.constant 0 : index
    %c0_20 = arith.constant 0 : index
    %19 = vector.load %arg6[%c0_19, %c0_20] : memref<1x128xf32, #tpu.memory_space<vmem>>, vector<1x128xf32>
    %20 = vector.broadcast %19 : vector<1x128xf32> to vector<2x128xf32>
    %21 = arith.addf %18, %20 : vector<2x128xf32>
    %c0_21 = arith.constant 0 : index
    %c0_22 = arith.constant 0 : index
    %22 = vector.load %arg7[%c0_21, %c0_22] : memref<2x128xf32, #tpu.memory_space<vmem>>, vector<2x128xf32>
    tpu.vector_store %arg7[%c0_21, %c0_22], %21 {strides = array<i32>} : memref<2x128xf32, #tpu.memory_space<vmem>>, vector<2x128xf32>,
    return
  }
  func.func @transform_0(%arg0: i32) -> (i32, i32) {
    %c0_i32 = arith.constant 0 : i32
    %c0_i32_0 = arith.constant 0 : i32
    return %arg0, %c0_i32 : i32, i32
  }
  func.func @transform_1(%arg0: i32) -> (i32, i32) {
    %c0_i32 = arith.constant 0 : i32
    %c0_i32_0 = arith.constant 0 : i32
    %c0_i32_1 = arith.constant 0 : i32
    return %c0_i32, %c0_i32_0 : i32, i32
  }
  func.func @transform_2(%arg0: i32) -> (i32, i32, i32) {
    %c0_i32 = arith.constant 0 : i32
    %c0_i32_0 = arith.constant 0 : i32
    %c0_i32_1 = arith.constant 0 : i32
    %c0_i32_2 = arith.constant 0 : i32
    return %c0_i32, %c0_i32_0, %c0_i32_1 : i32, i32, i32
  }
  func.func @transform_3(%arg0: i32) -> (i32, i32, i32) {
    %c0_i32 = arith.constant 0 : i32
    %c0_i32_0 = arith.constant 0 : i32
    %c0_i32_1 = arith.constant 0 : i32
    %c0_i32_2 = arith.constant 0 : i32
    return %c0_i32, %c0_i32_0, %c0_i32_1 : i32, i32, i32
  }
  func.func @transform_4(%arg0: i32) -> (i32, i32) {
    %c0_i32 = arith.constant 0 : i32
    %c0_i32_0 = arith.constant 0 : i32
    %c0_i32_1 = arith.constant 0 : i32
    return %c0_i32, %c0_i32_0 : i32, i32
  }
  func.func @transform_5(%arg0: i32) -> (i32, i32) {
    %c0_i32 = arith.constant 0 : i32
    %c0_i32_0 = arith.constant 0 : i32
    %c0_i32_1 = arith.constant 0 : i32
    return %c0_i32, %c0_i32_0 : i32, i32
  }
  func.func @transform_6(%arg0: i32) -> (i32, i32) {
    %c0_i32 = arith.constant 0 : i32
    %c0_i32_0 = arith.constant 0 : i32
    return %arg0, %c0_i32 : i32, i32
  }
}

</mosaic_0001>

<bundles_post_ra>
// kernel: tpu_custom_call.1
= control target key start
LH: loop header
LB: loop body
LE: loop exit
PB: predicated region body
PF: predicated region fallthrough
CT: control target
= control target key end

     0   :  { %11 = vsyncpa [#allocation3], 0  ;;  %s1994_s0 = inlined_call_operand.hbm [shape: f32[2,64], index: 0, kind: input, shape index: {}]   ;;  %s1995_s1 = inlined_call_operand.hbm [shape: f32[64,512], index: 1, kind: input, shape index: {}]   ;;  %s1996_s2 = inlined_call_operand.hbm [shape: f32[2,512,512], index: 2, kind: input, shape index: {}]   ;;  %s1997_s3 = inlined_call_operand.hbm [shape: f32[2,1,512], index: 3, kind: input, shape index: {}]   ;;  %s1998_s4 = inlined_call_operand.hbm [shape: f32[512,128], index: 4, kind: input, shape index: {}]   ;;  %s1999_s5 = inlined_call_operand.hbm [shape: f32[1,128], index: 5, kind: input, shape index: {}]   ;;  %s2000_s6 = inlined_call_operand.hbm [shape: f32[2,128], index: 6, kind: output, shape index: {}]  }
   0x1   :  { %12 = vsyncpa [#allocation6], 0 }
   0x2   :  { %13 = vsyncpa [#allocation9], 0 }
   0x3   :  { %14 = vsyncpa [#allocation12], 0 }
   0x4   :  { %15 = vsyncpa [#allocation4], 0  ;;  %s1874_s21 = smov [#allocation5]  }
   0x5   :  { %s31_s22 = sshll.u32 %s1874_s21, 4  ;;  %s32_s22 = int_to_ptr.vmem [resolvable:$true] %s31_s22 }
   0x6   :  { %s1732_s23 = scalar_lea.vmem %s32_s22, 4096  ;;  %p1737_p1 = scmp.lt.s32.totalorder %s32_s22, %s32_s22 }
   0x7   :  { %p1733_p0 = scmp.ne.s32.totalorder %s32_s22, %s1732_s23  ;;  %p1738_p2 = scmp.lt.s32.totalorder %s1732_s23, %s1732_s23 }
   0x9   :  { %p1739_p3 = por %p1738_p2, %p1737_p1 }
   0xb   :  { %p1740_p4 = pnand %p1739_p3, %p1733_p0 }
   0xd   :  { %1743 = shalt.err (!%p1740_p4)
}
   0xe   :  { %s1875_s24 = smov 512   ;;  %s1876_s25 = smov 32  }
   0xf   :  { %37 = dma.hbm_to_vmem [thread:$0]  %s1995_s1, 4096, %s32_s22, [#allocation6], %s1875_s24, %s1875_s24, %s1876_s25  }
  0x10   :  { %s1877_s28 = smov [#allocation8]  }
  0x11   :  { %s55_s29 = sshll.u32 %s1877_s28, 4  ;;  %s56_s29 = int_to_ptr.vmem [resolvable:$true] %s55_s29 }
  0x12   :  { %s1752_s30 = scalar_lea.vmem %s56_s29, 128  ;;  %p1757_p6 = scmp.lt.s32.totalorder %s56_s29, %s56_s29 }
  0x13   :  { %p1753_p5 = scmp.ne.s32.totalorder %s56_s29, %s1752_s30  ;;  %p1758_p7 = scmp.lt.s32.totalorder %s1752_s30, %s1752_s30 }
  0x15   :  { %p1759_p8 = por %p1758_p7, %p1757_p6 }
  0x17   :  { %p1760_p9 = pnand %p1759_p8, %p1753_p5 }
  0x19   :  { %1763 = shalt.err (!%p1760_p9)
}
  0x1a   :  { %s1878_s7 = smov 64   ;;  %s1879_s8 = smov 4  }
  0x1b   :  { %61 = dma.hbm_to_vmem [thread:$0]  %s1997_s3, 128, %s56_s29, [#allocation9], %s1878_s7, %s1878_s7, %s1879_s8  }
  0x1c   :  { %s1880_s11 = smov [#allocation2]   ;;  %s1881_s13 = smov [#allocation7]  }
  0x1d   :  { %s22_s12 = sshll.u32 %s1880_s11, 4  ;;  %s43_s1 = sshll.u32 %s1881_s13, 4  ;;  %s23_s12 = int_to_ptr.vmem [resolvable:$true] %s22_s12  ;;  %s44_s1 = int_to_ptr.vmem [resolvable:$true] %s43_s1 }
  0x1e   :  { %s1772_s14 = scalar_lea.vmem %s23_s12, 32  ;;  %p1777_p11 = scmp.lt.s32.totalorder %s23_s12, %s23_s12 }
  0x1f   :  { %p1773_p10 = scmp.ne.s32.totalorder %s23_s12, %s1772_s14  ;;  %p1778_p12 = scmp.lt.s32.totalorder %s1772_s14, %s1772_s14 }
  0x21   :  { %p1779_p13 = por %p1778_p12, %p1777_p11 }
  0x23   :  { %p1780_p0 = pnand %p1779_p13, %p1773_p10 }
  0x25   :  { %1783 = shalt.err (!%p1780_p0)
}
  0x26   :  { %25 = dma.hbm_to_vmem [thread:$0]  %s1994_s0, 32, %s23_s12, [#allocation3]  }
  0x27   :  { %s1792_s17 = scalar_lea.vmem %s44_s1, 65536  ;;  %p1797_p2 = scmp.lt.s32.totalorder %s44_s1, %s44_s1 }
  0x28   :  { %p1793_p1 = scmp.ne.s32.totalorder %s44_s1, %s1792_s17  ;;  %p1798_p3 = scmp.lt.s32.totalorder %s1792_s17, %s1792_s17 }
  0x2a   :  { %p1799_p4 = por %p1798_p3, %p1797_p2 }
  0x2c   :  { %p1800_p5 = pnand %p1799_p4, %p1793_p1 }
  0x2e   :  { %1803 = shalt.err (!%p1800_p5)
}
  0x2f   :  { %49 = dma.hbm_to_vmem [thread:$0]  %s1996_s2, 65536, %s44_s1, [#allocation6], %s1875_s24, %s1875_s24, %s1876_s25  }
  0x30   :  { %s1882_s19 = smov [#allocation10]  }
  0x31   :  { %s67_s20 = sshll.u32 %s1882_s19, 4  ;;  %s68_s20 = int_to_ptr.vmem [resolvable:$true] %s67_s20 }
  0x32   :  { %s1812_s21 = scalar_lea.vmem %s68_s20, 8192  ;;  %p1817_p7 = scmp.lt.s32.totalorder %s68_s20, %s68_s20 }
  0x33   :  { %p1813_p6 = scmp.ne.s32.totalorder %s68_s20, %s1812_s21  ;;  %p1818_p8 = scmp.lt.s32.totalorder %s1812_s21, %s1812_s21 }
  0x35   :  { %p1819_p9 = por %p1818_p8, %p1817_p7 }
  0x37   :  { %p1820_p10 = pnand %p1819_p9, %p1813_p6 }
  0x39   :  { %1823 = shalt.err (!%p1820_p10)
}
  0x3a   :  { %s1883_s0 = smov 128   ;;  %s1884_s22 = smov 8  }
  0x3b   :  { %73 = dma.hbm_to_vmem [thread:$0]  %s1998_s4, 8192, %s68_s20, [#allocation9], %s1883_s0, %s1883_s0, %s1884_s22  }
  0x3c   :  { %s1885_s27 = smov [#allocation11]  }
  0x3d   :  { %s80_s28 = sshll.u32 %s1885_s27, 4  ;;  %s81_s28 = int_to_ptr.vmem [resolvable:$true] %s80_s28 }
  0x3e   :  { %s1832_s2 = scalar_lea.vmem %s81_s28, 16  ;;  %s1836_s24 = scalar_lea.vmem %s81_s28, 32 }
  0x3f   :  { %p1833_p11 = scmp.ne.s32.totalorder %s81_s28, %s1832_s2  ;;  %p1837_p12 = scmp.lt.s32.totalorder %s81_s28, %s81_s28 }
  0x40   :  { %p1838_p13 = scmp.lt.s32.totalorder %s1836_s24, %s1832_s2 }
  0x42   :  { %p1839_p0 = por %p1838_p13, %p1837_p12 }
  0x44   :  { %p1840_p1 = pnand %p1839_p0, %p1833_p11 }
  0x46   :  { %1843 = shalt.err (!%p1840_p1)
}
  0x47   :  { %83 = dma.hbm_to_vmem [thread:$0]  %s1999_s5, 16, %s81_s28, [#allocation12]  }
  0x48   :  { %1864 = dma.done.wait [#allocation3], 32  }
  0x49   :  { %1865 = vsyncadd [#allocation3], 4294967264 }
  0x4a   :  { %1866 = dma.done.wait [#allocation6], 69632  }
  0x4b   :  { %1867 = vsyncadd [#allocation6], 4294897664 }
  0x4c   :  { %1868 = dma.done.wait [#allocation9], 8320  }
  0x4d   :  { %1869 = vsyncadd [#allocation9], 4294958976 }
  0x4e   :  { %1870 = dma.done.wait [#allocation12], 16  }
  0x4f   :  { %1871 = vsyncadd [#allocation12], 4294967280  ;;  %v1886_v0 = vmov 0.0   ;;  %v132_v1 = vld [vmem:[#allocation5 + $0xe8] sm:$0xff]  ;;  %v134_v2 = vld [vmem:[#allocation5 + $0xf8] sm:$0xff]  ;;  %vm135_vm0 = vcmask 523264  }
  0x50   :  { %203 = vmatprep.mubr.f32.mxu0 %v1886_v0  ;;  %274 = vmatprep.mubr.f32.mxu1 %v1886_v0  ;;  %v131_v3 = vld [vmem:[#allocation5 + $0xe0] sm:$0xff]  ;;  %v133_v4 = vld [vmem:[#allocation5 + $0xf0] sm:$0xff]  ;;  %v128_v5 = vld [vmem:[#allocation5 + $0xc8] sm:$0xff]  ;;  %s1887_s4 = smov [#allocation13]  }
  0x51   :  { %155 = vmatprep.subr.mxu0 %v132_v1  ;;  %226 = vmatprep.subr.mxu1 %v134_v2  ;;  %v130_v6 = vld [vmem:[#allocation5 + $0xd8] sm:$0xff]  ;;  %v127_v7 = vld [vmem:[#allocation5 + $0xc0] sm:$0xff]  ;;  %v129_v8 = vld [vmem:[#allocation5 + $0xd0] sm:$0xff]  ;;  %s1625_s5 = sshll.u32 %s1887_s4, 4  ;;  %s1626_s5 = int_to_ptr.vmem [resolvable:$true] %s1625_s5 }
  0x52   :  { %156 = vmatpush1.msra.mxu0 %v131_v3  ;;  %227 = vmatpush1.msra.mxu1 %v133_v4  ;;  %v124_v9 = vld [vmem:[#allocation5 + $0xa8] sm:$0xff]  ;;  %v126_v10 = vld [vmem:[#allocation5 + $0xb8] sm:$0xff]  ;;  %v123_v11 = vld [vmem:[#allocation5 + $0xa0] sm:$0xff]  ;;  %s1844_s30 = scalar_lea.vmem %s1626_s5, 32  ;;  %p1849_p3 = scmp.lt.s32.totalorder %s1626_s5, %s1626_s5 }
  0x53   :  { %157 = vmatprep.subr.mxu0 %v128_v5  ;;  %228 = vmatprep.subr.mxu1 %v130_v6  ;;  %v125_v12 = vld [vmem:[#allocation5 + $0xb0] sm:$0xff]  ;;  %v120_v13 = vld [vmem:[#allocation5 + $0x88] sm:$0xff]  ;;  %v122_v14 = vld [vmem:[#allocation5 + $0x98] sm:$0xff]  ;;  %p1845_p2 = scmp.ne.s32.totalorder %s1626_s5, %s1844_s30  ;;  %p1850_p4 = scmp.lt.s32.totalorder %s1844_s30, %s1844_s30 }
  0x54   :  { %158 = vmatpush1.msra.mxu0 %v127_v7  ;;  %229 = vmatpush1.msra.mxu1 %v129_v8  ;;  %v119_v15 = vld [vmem:[#allocation5 + $0x80] sm:$0xff]  ;;  %v121_v16 = vld [vmem:[#allocation5 + $0x90] sm:$0xff]  ;;  %v116_v17 = vld [vmem:[#allocation5 + $0x68] sm:$0xff] }
  0x55   :  { %159 = vmatprep.subr.mxu0 %v124_v9  ;;  %230 = vmatprep.subr.mxu1 %v126_v10  ;;  %v118_v18 = vld [vmem:[#allocation5 + $0x78] sm:$0xff]  ;;  %v115_v19 = vld [vmem:[#allocation5 + $0x60] sm:$0xff]  ;;  %v117_v20 = vld [vmem:[#allocation5 + $0x70] sm:$0xff]  ;;  %p1851_p5 = por %p1850_p4, %p1849_p3 }
  0x56   :  { %160 = vmatpush1.msra.mxu0 %v123_v11  ;;  %231 = vmatpush1.msra.mxu1 %v125_v12  ;;  %v112_v21 = vld [vmem:[#allocation5 + $0x48] sm:$0xff]  ;;  %v114_v22 = vld [vmem:[#allocation5 + $0x58] sm:$0xff]  ;;  %v111_v23 = vld [vmem:[#allocation5 + $0x40] sm:$0xff] }
  0x57   :  { %161 = vmatprep.subr.mxu0 %v120_v13  ;;  %232 = vmatprep.subr.mxu1 %v122_v14  ;;  %v113_v24 = vld [vmem:[#allocation5 + $0x50] sm:$0xff]  ;;  %v108_v25 = vld [vmem:[#allocation5 + $0x28] sm:$0xff]  ;;  %v110_v26 = vld [vmem:[#allocation5 + $0x38] sm:$0xff]  ;;  %p1852_p6 = pnand %p1851_p5, %p1845_p2 }
  0x58   :  { %162 = vmatpush1.msra.mxu0 %v119_v15  ;;  %233 = vmatpush1.msra.mxu1 %v121_v16  ;;  %v107_v27 = vld [vmem:[#allocation5 + $0x20] sm:$0xff]  ;;  %v109_v28 = vld [vmem:[#allocation5 + $0x30] sm:$0xff]  ;;  %v104_v29 = vld [vmem:[#allocation5 + $0x8] sm:$0xff] }
  0x59   :  { %163 = vmatprep.subr.mxu0 %v116_v17  ;;  %234 = vmatprep.subr.mxu1 %v118_v18  ;;  %v106_v30 = vld [vmem:[#allocation5 + $0x18] sm:$0xff]  ;;  %v103_v31 = vld [vmem:[#allocation5] sm:$0xff]  ;;  %v105_v32 = vld [vmem:[#allocation5 + $0x10] sm:$0xff] }
  0x5a   :  { %164 = vmatpush1.msra.mxu0 %v115_v19  ;;  %235 = vmatpush1.msra.mxu1 %v117_v20  ;;  %v102_v33 = vld [vmem:[#allocation2] sm:$0x3]  ;;  %v342_v34 = vld [vmem:[#allocation7 + $0x1e8] sm:$0xff]  ;;  %v341_v36 = vld [vmem:[#allocation7 + $0x1e0] sm:$0xff] }
  0x5b   :  { %165 = vmatprep.subr.mxu0 %v112_v21  ;;  %236 = vmatprep.subr.mxu1 %v114_v22  ;;  %v470_v35 = vld [vmem:[#allocation7 + $0x5e8] sm:$0xff]  ;;  %v469_v37 = vld [vmem:[#allocation7 + $0x5e0] sm:$0xff] }
  0x5c   :  { %166 = vmatpush1.msra.mxu0 %v111_v23  ;;  %237 = vmatpush1.msra.mxu1 %v113_v24  ;;  %v338_v38 = vld [vmem:[#allocation7 + $0x1c8] sm:$0xff]  ;;  %v337_v40 = vld [vmem:[#allocation7 + $0x1c0] sm:$0xff] }
  0x5d   :  { %167 = vmatprep.subr.mxu0 %v108_v25  ;;  %238 = vmatprep.subr.mxu1 %v110_v26  ;;  %v466_v39 = vld [vmem:[#allocation7 + $0x5c8] sm:$0xff]  ;;  %v465_v41 = vld [vmem:[#allocation7 + $0x5c0] sm:$0xff] }
  0x5e   :  { %168 = vmatpush1.msra.mxu0 %v107_v27  ;;  %239 = vmatpush1.msra.mxu1 %v109_v28  ;;  %v334_v42 = vld [vmem:[#allocation7 + $0x1a8] sm:$0xff]  ;;  %v333_v44 = vld [vmem:[#allocation7 + $0x1a0] sm:$0xff] }
  0x5f   :  { %169 = vmatprep.subr.mxu0 %v104_v29  ;;  %240 = vmatprep.subr.mxu1 %v106_v30  ;;  %v462_v43 = vld [vmem:[#allocation7 + $0x5a8] sm:$0xff]  ;;  %v461_v45 = vld [vmem:[#allocation7 + $0x5a0] sm:$0xff] }
  0x60   :  { %170 = vmatpush1.msra.mxu0 %v103_v31  ;;  %241 = vmatpush1.msra.mxu1 %v105_v32  ;;  %v330_v46 = vld [vmem:[#allocation7 + $0x188] sm:$0xff]  ;;  %v329_v48 = vld [vmem:[#allocation7 + $0x180] sm:$0xff] }
  0x61   :  { %1637 = vmatmul.mubr.msk.f32.vlgmr.msra.gmra.mxu0 %vm135_vm0, %v102_v33  ;;  %1638 = vmatmul.mubr.msk.f32.vlgmr.msra.gmra.mxu1 %vm135_vm0, %v102_v33  ;;  %v458_v47 = vld [vmem:[#allocation7 + $0x588] sm:$0xff]  ;;  %v457_v49 = vld [vmem:[#allocation7 + $0x580] sm:$0xff] }
  0x62   :  { %559 = vmatprep.subr.mxu0 %v342_v34  ;;  %630 = vmatprep.subr.mxu1 %v470_v35  ;;  %v326_v50 = vld [vmem:[#allocation7 + $0x168] sm:$0xff]  ;;  %v325_v52 = vld [vmem:[#allocation7 + $0x160] sm:$0xff] }
  0x63   :  { %560 = vmatpush1.msra.mxu0 %v341_v36  ;;  %631 = vmatpush1.msra.mxu1 %v469_v37  ;;  %v454_v51 = vld [vmem:[#allocation7 + $0x568] sm:$0xff]  ;;  %v453_v53 = vld [vmem:[#allocation7 + $0x560] sm:$0xff] }
  0x64   :  { %561 = vmatprep.subr.mxu0 %v338_v38  ;;  %632 = vmatprep.subr.mxu1 %v466_v39  ;;  %v322_v54 = vld [vmem:[#allocation7 + $0x148] sm:$0xff]  ;;  %v321_v56 = vld [vmem:[#allocation7 + $0x140] sm:$0xff] }
  0x65   :  { %562 = vmatpush1.msra.mxu0 %v337_v40  ;;  %633 = vmatpush1.msra.mxu1 %v465_v41  ;;  %v450_v55 = vld [vmem:[#allocation7 + $0x548] sm:$0xff]  ;;  %v449_v57 = vld [vmem:[#allocation7 + $0x540] sm:$0xff] }
  0x66   :  { %563 = vmatprep.subr.mxu0 %v334_v42  ;;  %634 = vmatprep.subr.mxu1 %v462_v43  ;;  %v318_v58 = vld [vmem:[#allocation7 + $0x128] sm:$0xff]  ;;  %v317_v60 = vld [vmem:[#allocation7 + $0x120] sm:$0xff] }
  0x67   :  { %564 = vmatpush1.msra.mxu0 %v333_v44  ;;  %635 = vmatpush1.msra.mxu1 %v461_v45  ;;  %v446_v59 = vld [vmem:[#allocation7 + $0x528] sm:$0xff]  ;;  %v445_v61 = vld [vmem:[#allocation7 + $0x520] sm:$0xff] }
  0x68   :  { %565 = vmatprep.subr.mxu0 %v330_v46  ;;  %636 = vmatprep.subr.mxu1 %v458_v47  ;;  %v314_v62 = vld [vmem:[#allocation7 + $0x108] sm:$0xff]  ;;  %v313_v0 = vld [vmem:[#allocation7 + $0x100] sm:$0xff] }
  0x69   :  { %566 = vmatpush1.msra.mxu0 %v329_v48  ;;  %637 = vmatpush1.msra.mxu1 %v457_v49  ;;  %v442_v63 = vld [vmem:[#allocation7 + $0x508] sm:$0xff]  ;;  %v441_v1 = vld [vmem:[#allocation7 + $0x500] sm:$0xff] }
  0x6a   :  { %567 = vmatprep.subr.mxu0 %v326_v50  ;;  %638 = vmatprep.subr.mxu1 %v454_v51  ;;  %v310_v2 = vld [vmem:[#allocation7 + $0xe8] sm:$0xff]  ;;  %v309_v4 = vld [vmem:[#allocation7 + $0xe0] sm:$0xff] }
  0x6b   :  { %568 = vmatpush1.msra.mxu0 %v325_v52  ;;  %639 = vmatpush1.msra.mxu1 %v453_v53  ;;  %v438_v3 = vld [vmem:[#allocation7 + $0x4e8] sm:$0xff]  ;;  %v437_v5 = vld [vmem:[#allocation7 + $0x4e0] sm:$0xff] }
  0x6c   :  { %569 = vmatprep.subr.mxu0 %v322_v54  ;;  %640 = vmatprep.subr.mxu1 %v450_v55  ;;  %v306_v6 = vld [vmem:[#allocation7 + $0xc8] sm:$0xff]  ;;  %v305_v8 = vld [vmem:[#allocation7 + $0xc0] sm:$0xff] }
  0x6d   :  { %570 = vmatpush1.msra.mxu0 %v321_v56  ;;  %641 = vmatpush1.msra.mxu1 %v449_v57  ;;  %v434_v7 = vld [vmem:[#allocation7 + $0x4c8] sm:$0xff]  ;;  %v433_v9 = vld [vmem:[#allocation7 + $0x4c0] sm:$0xff] }
  0x6e   :  { %571 = vmatprep.subr.mxu0 %v318_v58  ;;  %642 = vmatprep.subr.mxu1 %v446_v59  ;;  %v302_v10 = vld [vmem:[#allocation7 + $0xa8] sm:$0xff]  ;;  %v301_v12 = vld [vmem:[#allocation7 + $0xa0] sm:$0xff] }
  0x6f   :  { %572 = vmatpush1.msra.mxu0 %v317_v60  ;;  %643 = vmatpush1.msra.mxu1 %v445_v61  ;;  %v430_v11 = vld [vmem:[#allocation7 + $0x4a8] sm:$0xff]  ;;  %v429_v13 = vld [vmem:[#allocation7 + $0x4a0] sm:$0xff] }
  0x70   :  { %573 = vmatprep.subr.mxu0 %v314_v62  ;;  %644 = vmatprep.subr.mxu1 %v442_v63  ;;  %v298_v14 = vld [vmem:[#allocation7 + $0x88] sm:$0xff]  ;;  %v297_v16 = vld [vmem:[#allocation7 + $0x80] sm:$0xff] }
  0x71   :  { %574 = vmatpush1.msra.mxu0 %v313_v0  ;;  %645 = vmatpush1.msra.mxu1 %v441_v1  ;;  %v426_v15 = vld [vmem:[#allocation7 + $0x488] sm:$0xff]  ;;  %v425_v17 = vld [vmem:[#allocation7 + $0x480] sm:$0xff] }
  0x72   :  { %575 = vmatprep.subr.mxu0 %v310_v2  ;;  %646 = vmatprep.subr.mxu1 %v438_v3  ;;  %v294_v18 = vld [vmem:[#allocation7 + $0x68] sm:$0xff]  ;;  %v293_v20 = vld [vmem:[#allocation7 + $0x60] sm:$0xff] }
  0x73   :  { %576 = vmatpush1.msra.mxu0 %v309_v4  ;;  %647 = vmatpush1.msra.mxu1 %v437_v5  ;;  %v422_v19 = vld [vmem:[#allocation7 + $0x468] sm:$0xff]  ;;  %v421_v21 = vld [vmem:[#allocation7 + $0x460] sm:$0xff] }
  0x74   :  { %577 = vmatprep.subr.mxu0 %v306_v6  ;;  %648 = vmatprep.subr.mxu1 %v434_v7  ;;  %v290_v22 = vld [vmem:[#allocation7 + $0x48] sm:$0xff]  ;;  %v289_v24 = vld [vmem:[#allocation7 + $0x40] sm:$0xff] }
  0x75   :  { %578 = vmatpush1.msra.mxu0 %v305_v8  ;;  %649 = vmatpush1.msra.mxu1 %v433_v9  ;;  %v418_v23 = vld [vmem:[#allocation7 + $0x448] sm:$0xff]  ;;  %v417_v25 = vld [vmem:[#allocation7 + $0x440] sm:$0xff] }
  0x76   :  { %579 = vmatprep.subr.mxu0 %v302_v10  ;;  %650 = vmatprep.subr.mxu1 %v430_v11  ;;  %v286_v26 = vld [vmem:[#allocation7 + $0x28] sm:$0xff]  ;;  %v285_v28 = vld [vmem:[#allocation7 + $0x20] sm:$0xff] }
  0x77   :  { %580 = vmatpush1.msra.mxu0 %v301_v12  ;;  %651 = vmatpush1.msra.mxu1 %v429_v13  ;;  %v414_v27 = vld [vmem:[#allocation7 + $0x428] sm:$0xff]  ;;  %v413_v29 = vld [vmem:[#allocation7 + $0x420] sm:$0xff] }
  0x78   :  { %581 = vmatprep.subr.mxu0 %v298_v14  ;;  %652 = vmatprep.subr.mxu1 %v426_v15  ;;  %v282_v30 = vld [vmem:[#allocation7 + $0x8] sm:$0xff]  ;;  %v281_v32 = vld [vmem:[#allocation7] sm:$0xff] }
  0x79   :  { %582 = vmatpush1.msra.mxu0 %v297_v16  ;;  %653 = vmatpush1.msra.mxu1 %v425_v17  ;;  %v410_v31 = vld [vmem:[#allocation7 + $0x408] sm:$0xff]  ;;  %v409_v33 = vld [vmem:[#allocation7 + $0x400] sm:$0xff] }
  0x7a   :  { %583 = vmatprep.subr.mxu0 %v294_v18  ;;  %654 = vmatprep.subr.mxu1 %v422_v19  ;;  %v406_v34 = vld [vmem:[#allocation7 + $0x3e8] sm:$0xff]  ;;  %v405_v36 = vld [vmem:[#allocation7 + $0x3e0] sm:$0xff] }
  0x7b   :  { %584 = vmatpush1.msra.mxu0 %v293_v20  ;;  %655 = vmatpush1.msra.mxu1 %v421_v21  ;;  %v534_v35 = vld [vmem:[#allocation7 + $0x7e8] sm:$0xff]  ;;  %v533_v37 = vld [vmem:[#allocation7 + $0x7e0] sm:$0xff] }
  0x7c   :  { %585 = vmatprep.subr.mxu0 %v290_v22  ;;  %656 = vmatprep.subr.mxu1 %v418_v23  ;;  %v402_v38 = vld [vmem:[#allocation7 + $0x3c8] sm:$0xff]  ;;  %v401_v40 = vld [vmem:[#allocation7 + $0x3c0] sm:$0xff] }
  0x7d   :  { %586 = vmatpush1.msra.mxu0 %v289_v24  ;;  %657 = vmatpush1.msra.mxu1 %v417_v25  ;;  %v530_v39 = vld [vmem:[#allocation7 + $0x7c8] sm:$0xff]  ;;  %v529_v41 = vld [vmem:[#allocation7 + $0x7c0] sm:$0xff] }
  0x7e   :  { %587 = vmatprep.subr.mxu0 %v286_v26  ;;  %658 = vmatprep.subr.mxu1 %v414_v27  ;;  %v398_v42 = vld [vmem:[#allocation7 + $0x3a8] sm:$0xff]  ;;  %v397_v44 = vld [vmem:[#allocation7 + $0x3a0] sm:$0xff] }
  0x7f   :  { %588 = vmatpush1.msra.mxu0 %v285_v28  ;;  %659 = vmatpush1.msra.mxu1 %v413_v29  ;;  %v526_v43 = vld [vmem:[#allocation7 + $0x7a8] sm:$0xff]  ;;  %v525_v45 = vld [vmem:[#allocation7 + $0x7a0] sm:$0xff] }
  0x80   :  { %589 = vmatprep.subr.mxu0 %v282_v30  ;;  %660 = vmatprep.subr.mxu1 %v410_v31  ;;  %v394_v46 = vld [vmem:[#allocation7 + $0x388] sm:$0xff]  ;;  %v393_v48 = vld [vmem:[#allocation7 + $0x380] sm:$0xff] }
  0x81   :  { %590 = vmatpush1.msra.mxu0 %v281_v32  ;;  %661 = vmatpush1.msra.mxu1 %v409_v33  ;;  %v522_v47 = vld [vmem:[#allocation7 + $0x788] sm:$0xff]  ;;  %v521_v49 = vld [vmem:[#allocation7 + $0x780] sm:$0xff] }
  0x82   :  { %591 = vmatprep.subr.mxu0 %v406_v34  ;;  %662 = vmatprep.subr.mxu1 %v534_v35  ;;  %v390_v50 = vld [vmem:[#allocation7 + $0x368] sm:$0xff]  ;;  %v389_v52 = vld [vmem:[#allocation7 + $0x360] sm:$0xff]  ;;  %v344_v34 = vld [vmem:[#allocation7 + $0x1f8] sm:$0xff] }
  0x83   :  { %592 = vmatpush2.msra.mxu0 %v405_v36  ;;  %663 = vmatpush2.msra.mxu1 %v533_v37  ;;  %v518_v51 = vld [vmem:[#allocation7 + $0x768] sm:$0xff]  ;;  %v517_v53 = vld [vmem:[#allocation7 + $0x760] sm:$0xff]  ;;  %v472_v35 = vld [vmem:[#allocation7 + $0x5f8] sm:$0xff] }
  0x84   :  { %593 = vmatprep.subr.mxu0 %v402_v38  ;;  %664 = vmatprep.subr.mxu1 %v530_v39  ;;  %v386_v54 = vld [vmem:[#allocation7 + $0x348] sm:$0xff]  ;;  %v385_v56 = vld [vmem:[#allocation7 + $0x340] sm:$0xff] }
  0x85   :  { %594 = vmatpush2.msra.mxu0 %v401_v40  ;;  %665 = vmatpush2.msra.mxu1 %v529_v41  ;;  %v514_v55 = vld [vmem:[#allocation7 + $0x748] sm:$0xff]  ;;  %v513_v57 = vld [vmem:[#allocation7 + $0x740] sm:$0xff]  ;;  %v343_v40 = vld [vmem:[#allocation7 + $0x1f0] sm:$0xff] }
  0x86   :  { %595 = vmatprep.subr.mxu0 %v398_v42  ;;  %666 = vmatprep.subr.mxu1 %v526_v43  ;;  %v382_v58 = vld [vmem:[#allocation7 + $0x328] sm:$0xff]  ;;  %v381_v60 = vld [vmem:[#allocation7 + $0x320] sm:$0xff]  ;;  %v471_v41 = vld [vmem:[#allocation7 + $0x5f0] sm:$0xff] }
  0x87   :  { %596 = vmatpush2.msra.mxu0 %v397_v44  ;;  %667 = vmatpush2.msra.mxu1 %v525_v45  ;;  %v510_v59 = vld [vmem:[#allocation7 + $0x728] sm:$0xff]  ;;  %v509_v61 = vld [vmem:[#allocation7 + $0x720] sm:$0xff]  ;;  %v340_v42 = vld [vmem:[#allocation7 + $0x1d8] sm:$0xff] }
  0x88   :  { %597 = vmatprep.subr.mxu0 %v394_v46  ;;  %668 = vmatprep.subr.mxu1 %v522_v47  ;;  %v378_v62 = vld [vmem:[#allocation7 + $0x308] sm:$0xff]  ;;  %v377_v0 = vld [vmem:[#allocation7 + $0x300] sm:$0xff]  ;;  %v468_v43 = vld [vmem:[#allocation7 + $0x5d8] sm:$0xff] }
  0x89   :  { %598 = vmatpush2.msra.mxu0 %v393_v48  ;;  %669 = vmatpush2.msra.mxu1 %v521_v49  ;;  %v506_v63 = vld [vmem:[#allocation7 + $0x708] sm:$0xff]  ;;  %v505_v1 = vld [vmem:[#allocation7 + $0x700] sm:$0xff]  ;;  %v339_v44 = vld [vmem:[#allocation7 + $0x1d0] sm:$0xff] }
  0x8a   :  { %599 = vmatprep.subr.mxu0 %v390_v50  ;;  %670 = vmatprep.subr.mxu1 %v518_v51  ;;  %v374_v2 = vld [vmem:[#allocation7 + $0x2e8] sm:$0xff]  ;;  %v373_v4 = vld [vmem:[#allocation7 + $0x2e0] sm:$0xff]  ;;  %v467_v45 = vld [vmem:[#allocation7 + $0x5d0] sm:$0xff] }
  0x8b   :  { %600 = vmatpush2.msra.mxu0 %v389_v52  ;;  %671 = vmatpush2.msra.mxu1 %v517_v53  ;;  %v502_v3 = vld [vmem:[#allocation7 + $0x6e8] sm:$0xff]  ;;  %v501_v5 = vld [vmem:[#allocation7 + $0x6e0] sm:$0xff]  ;;  %v336_v46 = vld [vmem:[#allocation7 + $0x1b8] sm:$0xff] }
  0x8c   :  { %601 = vmatprep.subr.mxu0 %v386_v54  ;;  %672 = vmatprep.subr.mxu1 %v514_v55  ;;  %v370_v6 = vld [vmem:[#allocation7 + $0x2c8] sm:$0xff]  ;;  %v369_v8 = vld [vmem:[#allocation7 + $0x2c0] sm:$0xff]  ;;  %v464_v47 = vld [vmem:[#allocation7 + $0x5b8] sm:$0xff] }
  0x8d   :  { %602 = vmatpush2.msra.mxu0 %v385_v56  ;;  %673 = vmatpush2.msra.mxu1 %v513_v57  ;;  %v498_v7 = vld [vmem:[#allocation7 + $0x6c8] sm:$0xff]  ;;  %v497_v9 = vld [vmem:[#allocation7 + $0x6c0] sm:$0xff]  ;;  %v335_v48 = vld [vmem:[#allocation7 + $0x1b0] sm:$0xff] }
  0x8e   :  { %603 = vmatprep.subr.mxu0 %v382_v58  ;;  %674 = vmatprep.subr.mxu1 %v510_v59  ;;  %v366_v10 = vld [vmem:[#allocation7 + $0x2a8] sm:$0xff]  ;;  %v365_v12 = vld [vmem:[#allocation7 + $0x2a0] sm:$0xff]  ;;  %v463_v49 = vld [vmem:[#allocation7 + $0x5b0] sm:$0xff] }
  0x8f   :  { %604 = vmatpush2.msra.mxu0 %v381_v60  ;;  %675 = vmatpush2.msra.mxu1 %v509_v61  ;;  %v494_v11 = vld [vmem:[#allocation7 + $0x6a8] sm:$0xff]  ;;  %v493_v13 = vld [vmem:[#allocation7 + $0x6a0] sm:$0xff]  ;;  %v332_v50 = vld [vmem:[#allocation7 + $0x198] sm:$0xff] }
  0x90   :  { %605 = vmatprep.subr.mxu0 %v378_v62  ;;  %676 = vmatprep.subr.mxu1 %v506_v63  ;;  %v362_v14 = vld [vmem:[#allocation7 + $0x288] sm:$0xff]  ;;  %v361_v16 = vld [vmem:[#allocation7 + $0x280] sm:$0xff]  ;;  %v460_v51 = vld [vmem:[#allocation7 + $0x598] sm:$0xff] }
  0x91   :  { %606 = vmatpush2.msra.mxu0 %v377_v0  ;;  %677 = vmatpush2.msra.mxu1 %v505_v1  ;;  %v490_v15 = vld [vmem:[#allocation7 + $0x688] sm:$0xff]  ;;  %v489_v17 = vld [vmem:[#allocation7 + $0x680] sm:$0xff]  ;;  %v331_v52 = vld [vmem:[#allocation7 + $0x190] sm:$0xff] }
  0x92   :  { %607 = vmatprep.subr.mxu0 %v374_v2  ;;  %678 = vmatprep.subr.mxu1 %v502_v3  ;;  %v358_v18 = vld [vmem:[#allocation7 + $0x268] sm:$0xff]  ;;  %v357_v20 = vld [vmem:[#allocation7 + $0x260] sm:$0xff]  ;;  %v459_v53 = vld [vmem:[#allocation7 + $0x590] sm:$0xff] }
  0x93   :  { %608 = vmatpush2.msra.mxu0 %v373_v4  ;;  %679 = vmatpush2.msra.mxu1 %v501_v5  ;;  %v486_v19 = vld [vmem:[#allocation7 + $0x668] sm:$0xff]  ;;  %v485_v21 = vld [vmem:[#allocation7 + $0x660] sm:$0xff]  ;;  %v328_v54 = vld [vmem:[#allocation7 + $0x178] sm:$0xff] }
  0x94   :  { %609 = vmatprep.subr.mxu0 %v370_v6  ;;  %680 = vmatprep.subr.mxu1 %v498_v7  ;;  %v354_v22 = vld [vmem:[#allocation7 + $0x248] sm:$0xff]  ;;  %v353_v24 = vld [vmem:[#allocation7 + $0x240] sm:$0xff]  ;;  %v456_v55 = vld [vmem:[#allocation7 + $0x578] sm:$0xff] }
  0x95   :  { %610 = vmatpush2.msra.mxu0 %v369_v8  ;;  %681 = vmatpush2.msra.mxu1 %v497_v9  ;;  %v482_v23 = vld [vmem:[#allocation7 + $0x648] sm:$0xff]  ;;  %v481_v25 = vld [vmem:[#allocation7 + $0x640] sm:$0xff]  ;;  %v327_v56 = vld [vmem:[#allocation7 + $0x170] sm:$0xff] }
  0x96   :  { %611 = vmatprep.subr.mxu0 %v366_v10  ;;  %682 = vmatprep.subr.mxu1 %v494_v11  ;;  %v350_v26 = vld [vmem:[#allocation7 + $0x228] sm:$0xff]  ;;  %v349_v28 = vld [vmem:[#allocation7 + $0x220] sm:$0xff]  ;;  %v455_v57 = vld [vmem:[#allocation7 + $0x570] sm:$0xff] }
  0x97   :  { %612 = vmatpush2.msra.mxu0 %v365_v12  ;;  %683 = vmatpush2.msra.mxu1 %v493_v13  ;;  %v478_v27 = vld [vmem:[#allocation7 + $0x628] sm:$0xff]  ;;  %v477_v29 = vld [vmem:[#allocation7 + $0x620] sm:$0xff]  ;;  %v324_v58 = vld [vmem:[#allocation7 + $0x158] sm:$0xff] }
  0x98   :  { %613 = vmatprep.subr.mxu0 %v362_v14  ;;  %684 = vmatprep.subr.mxu1 %v490_v15  ;;  %v346_v30 = vld [vmem:[#allocation7 + $0x208] sm:$0xff]  ;;  %v345_v32 = vld [vmem:[#allocation7 + $0x200] sm:$0xff]  ;;  %v452_v59 = vld [vmem:[#allocation7 + $0x558] sm:$0xff] }
  0x99   :  { %614 = vmatpush2.msra.mxu0 %v361_v16  ;;  %685 = vmatpush2.msra.mxu1 %v489_v17  ;;  %v474_v31 = vld [vmem:[#allocation7 + $0x608] sm:$0xff]  ;;  %v473_v33 = vld [vmem:[#allocation7 + $0x600] sm:$0xff]  ;;  %v323_v60 = vld [vmem:[#allocation7 + $0x150] sm:$0xff] }
  0x9a   :  { %615 = vmatprep.subr.mxu0 %v358_v18  ;;  %686 = vmatprep.subr.mxu1 %v486_v19  ;;  %v451_v61 = vld [vmem:[#allocation7 + $0x550] sm:$0xff]  ;;  %v320_v62 = vld [vmem:[#allocation7 + $0x138] sm:$0xff] }
  0x9b   :  { %616 = vmatpush2.msra.mxu0 %v357_v20  ;;  %687 = vmatpush2.msra.mxu1 %v485_v21  ;;  %v448_v63 = vld [vmem:[#allocation7 + $0x538] sm:$0xff]  ;;  %v319_v0 = vld [vmem:[#allocation7 + $0x130] sm:$0xff] }
  0x9c   :  { %617 = vmatprep.subr.mxu0 %v354_v22  ;;  %688 = vmatprep.subr.mxu1 %v482_v23  ;;  %v447_v1 = vld [vmem:[#allocation7 + $0x530] sm:$0xff]  ;;  %v316_v2 = vld [vmem:[#allocation7 + $0x118] sm:$0xff] }
  0x9d   :  { %618 = vmatpush2.msra.mxu0 %v353_v24  ;;  %689 = vmatpush2.msra.mxu1 %v481_v25  ;;  %v444_v3 = vld [vmem:[#allocation7 + $0x518] sm:$0xff]  ;;  %v315_v4 = vld [vmem:[#allocation7 + $0x110] sm:$0xff] }
  0x9e   :  { %619 = vmatprep.subr.mxu0 %v350_v26  ;;  %690 = vmatprep.subr.mxu1 %v478_v27  ;;  %v443_v5 = vld [vmem:[#allocation7 + $0x510] sm:$0xff]  ;;  %v312_v6 = vld [vmem:[#allocation7 + $0xf8] sm:$0xff] }
  0x9f   :  { %620 = vmatpush2.msra.mxu0 %v349_v28  ;;  %691 = vmatpush2.msra.mxu1 %v477_v29  ;;  %v440_v7 = vld [vmem:[#allocation7 + $0x4f8] sm:$0xff]  ;;  %v311_v8 = vld [vmem:[#allocation7 + $0xf0] sm:$0xff] }
  0xa0   :  { %621 = vmatprep.subr.mxu0 %v346_v30  ;;  %692 = vmatprep.subr.mxu1 %v474_v31  ;;  %v439_v9 = vld [vmem:[#allocation7 + $0x4f0] sm:$0xff]  ;;  %v308_v10 = vld [vmem:[#allocation7 + $0xd8] sm:$0xff] }
  0xa1   :  { %622 = vmatpush2.msra.mxu0 %v345_v32  ;;  %693 = vmatpush2.msra.mxu1 %v473_v33  ;;  %v436_v11 = vld [vmem:[#allocation7 + $0x4d8] sm:$0xff]  ;;  %v307_v12 = vld [vmem:[#allocation7 + $0xd0] sm:$0xff] }
  0xa2   :  { %701 = vmatprep.subr.mxu0 %v344_v34  ;;  %772 = vmatprep.subr.mxu1 %v472_v35  ;;  %v435_v13 = vld [vmem:[#allocation7 + $0x4d0] sm:$0xff]  ;;  %v304_v14 = vld [vmem:[#allocation7 + $0xb8] sm:$0xff] }
  0xa3   :  { %v432_v15 = vld [vmem:[#allocation7 + $0x4b8] sm:$0xff]  ;;  %v303_v16 = vld [vmem:[#allocation7 + $0xb0] sm:$0xff] }
  0xa4   :  { %v431_v17 = vld [vmem:[#allocation7 + $0x4b0] sm:$0xff]  ;;  %v300_v18 = vld [vmem:[#allocation7 + $0x98] sm:$0xff] }
  0xa5   :  { %v428_v19 = vld [vmem:[#allocation7 + $0x498] sm:$0xff]  ;;  %v299_v20 = vld [vmem:[#allocation7 + $0x90] sm:$0xff] }
  0xa6   :  { %v427_v21 = vld [vmem:[#allocation7 + $0x490] sm:$0xff]  ;;  %v296_v22 = vld [vmem:[#allocation7 + $0x78] sm:$0xff] }
  0xa7   :  { %v424_v23 = vld [vmem:[#allocation7 + $0x478] sm:$0xff]  ;;  %v295_v24 = vld [vmem:[#allocation7 + $0x70] sm:$0xff] }
  0xa8   :  { %v423_v25 = vld [vmem:[#allocation7 + $0x470] sm:$0xff]  ;;  %v292_v26 = vld [vmem:[#allocation7 + $0x58] sm:$0xff] }
  0xa9   :  { %v420_v27 = vld [vmem:[#allocation7 + $0x458] sm:$0xff]  ;;  %v291_v28 = vld [vmem:[#allocation7 + $0x50] sm:$0xff] }
  0xaa   :  { %v419_v29 = vld [vmem:[#allocation7 + $0x450] sm:$0xff]  ;;  %v288_v30 = vld [vmem:[#allocation7 + $0x38] sm:$0xff] }
  0xab   :  { %v416_v31 = vld [vmem:[#allocation7 + $0x438] sm:$0xff]  ;;  %v287_v32 = vld [vmem:[#allocation7 + $0x30] sm:$0xff] }
  0xac   :  { %v415_v33 = vld [vmem:[#allocation7 + $0x430] sm:$0xff]  ;;  %v284_v34 = vld [vmem:[#allocation7 + $0x18] sm:$0xff] }
  0xad   :  { %v412_v35 = vld [vmem:[#allocation7 + $0x418] sm:$0xff] }
 0x121   :  { %v1947_v36 = vpop.f32.mrf.mxu0  ;;  %v1949_v37 = vpop.f32.mrf.mxu1 }
 0x123   :  { %v207_v38 = vpop.f32.mrf.mxu0  ;;  %v278_v39 = vpop.f32.mrf.mxu1 }
 0x124   :  { %623 = vmatprep.mubr.f32.mxu0 %v207_v38  ;;  %694 = vmatprep.mubr.f32.mxu1 %v278_v39 }
 0x125   :  { %624 = vmatmul.mubr.f32.vlgmr.msra.gmra.mxu0 %v1947_v36  ;;  %695 = vmatmul.mubr.f32.vlgmr.msra.gmra.mxu1 %v1949_v37 }
 0x126   :  { %702 = vmatpush1.msra.mxu0 %v343_v40  ;;  %773 = vmatpush1.msra.mxu1 %v471_v41  ;;  %v408_v40 = vld [vmem:[#allocation7 + $0x3f8] sm:$0xff] }
 0x127   :  { %703 = vmatprep.subr.mxu0 %v340_v42  ;;  %765 = vmatprep.mubr.f32.mxu0 %v207_v38  ;;  %v283_v38 = vld [vmem:[#allocation7 + $0x10] sm:$0xff]  ;;  %v536_v41 = vld [vmem:[#allocation7 + $0x7f8] sm:$0xff] }
 0x128   :  { %774 = vmatprep.subr.mxu1 %v468_v43  ;;  %836 = vmatprep.mubr.f32.mxu1 %v278_v39  ;;  %v411_v39 = vld [vmem:[#allocation7 + $0x410] sm:$0xff] }
 0x129   :  { %704 = vmatpush1.msra.mxu0 %v339_v44  ;;  %775 = vmatpush1.msra.mxu1 %v467_v45  ;;  %v407_v42 = vld [vmem:[#allocation7 + $0x3f0] sm:$0xff]  ;;  %v404_v44 = vld [vmem:[#allocation7 + $0x3d8] sm:$0xff] }
 0x12a   :  { %705 = vmatprep.subr.mxu0 %v336_v46  ;;  %776 = vmatprep.subr.mxu1 %v464_v47  ;;  %v535_v43 = vld [vmem:[#allocation7 + $0x7f0] sm:$0xff]  ;;  %v532_v45 = vld [vmem:[#allocation7 + $0x7d8] sm:$0xff] }
 0x12b   :  { %706 = vmatpush1.msra.mxu0 %v335_v48  ;;  %777 = vmatpush1.msra.mxu1 %v463_v49  ;;  %v403_v46 = vld [vmem:[#allocation7 + $0x3d0] sm:$0xff]  ;;  %v400_v48 = vld [vmem:[#allocation7 + $0x3b8] sm:$0xff] }
 0x12c   :  { %707 = vmatprep.subr.mxu0 %v332_v50  ;;  %778 = vmatprep.subr.mxu1 %v460_v51  ;;  %v531_v47 = vld [vmem:[#allocation7 + $0x7d0] sm:$0xff]  ;;  %v528_v49 = vld [vmem:[#allocation7 + $0x7b8] sm:$0xff] }
 0x12d   :  { %708 = vmatpush1.msra.mxu0 %v331_v52  ;;  %779 = vmatpush1.msra.mxu1 %v459_v53  ;;  %v399_v50 = vld [vmem:[#allocation7 + $0x3b0] sm:$0xff]  ;;  %v396_v52 = vld [vmem:[#allocation7 + $0x398] sm:$0xff] }
 0x12e   :  { %709 = vmatprep.subr.mxu0 %v328_v54  ;;  %780 = vmatprep.subr.mxu1 %v456_v55  ;;  %v527_v51 = vld [vmem:[#allocation7 + $0x7b0] sm:$0xff]  ;;  %v524_v53 = vld [vmem:[#allocation7 + $0x798] sm:$0xff] }
 0x12f   :  { %710 = vmatpush1.msra.mxu0 %v327_v56  ;;  %781 = vmatpush1.msra.mxu1 %v455_v57  ;;  %v395_v54 = vld [vmem:[#allocation7 + $0x390] sm:$0xff]  ;;  %v392_v56 = vld [vmem:[#allocation7 + $0x378] sm:$0xff] }
 0x130   :  { %711 = vmatprep.subr.mxu0 %v324_v58  ;;  %782 = vmatprep.subr.mxu1 %v452_v59  ;;  %v523_v55 = vld [vmem:[#allocation7 + $0x790] sm:$0xff]  ;;  %v520_v57 = vld [vmem:[#allocation7 + $0x778] sm:$0xff] }
 0x131   :  { %712 = vmatpush1.msra.mxu0 %v323_v60  ;;  %783 = vmatpush1.msra.mxu1 %v451_v61  ;;  %v391_v58 = vld [vmem:[#allocation7 + $0x370] sm:$0xff]  ;;  %v388_v60 = vld [vmem:[#allocation7 + $0x358] sm:$0xff] }
 0x132   :  { %713 = vmatprep.subr.mxu0 %v320_v62  ;;  %784 = vmatprep.subr.mxu1 %v448_v63  ;;  %v519_v59 = vld [vmem:[#allocation7 + $0x770] sm:$0xff]  ;;  %v516_v61 = vld [vmem:[#allocation7 + $0x758] sm:$0xff] }
 0x133   :  { %714 = vmatpush1.msra.mxu0 %v319_v0  ;;  %785 = vmatpush1.msra.mxu1 %v447_v1  ;;  %v387_v62 = vld [vmem:[#allocation7 + $0x350] sm:$0xff]  ;;  %v384_v0 = vld [vmem:[#allocation7 + $0x338] sm:$0xff] }
 0x134   :  { %715 = vmatprep.subr.mxu0 %v316_v2  ;;  %786 = vmatprep.subr.mxu1 %v444_v3  ;;  %v515_v63 = vld [vmem:[#allocation7 + $0x750] sm:$0xff]  ;;  %v512_v1 = vld [vmem:[#allocation7 + $0x738] sm:$0xff] }
 0x135   :  { %716 = vmatpush1.msra.mxu0 %v315_v4  ;;  %787 = vmatpush1.msra.mxu1 %v443_v5  ;;  %v383_v2 = vld [vmem:[#allocation7 + $0x330] sm:$0xff]  ;;  %v380_v4 = vld [vmem:[#allocation7 + $0x318] sm:$0xff] }
 0x136   :  { %717 = vmatprep.subr.mxu0 %v312_v6  ;;  %788 = vmatprep.subr.mxu1 %v440_v7  ;;  %v511_v3 = vld [vmem:[#allocation7 + $0x730] sm:$0xff]  ;;  %v508_v5 = vld [vmem:[#allocation7 + $0x718] sm:$0xff] }
 0x137   :  { %718 = vmatpush1.msra.mxu0 %v311_v8  ;;  %789 = vmatpush1.msra.mxu1 %v439_v9  ;;  %v379_v6 = vld [vmem:[#allocation7 + $0x310] sm:$0xff]  ;;  %v376_v8 = vld [vmem:[#allocation7 + $0x2f8] sm:$0xff] }
 0x138   :  { %719 = vmatprep.subr.mxu0 %v308_v10  ;;  %790 = vmatprep.subr.mxu1 %v436_v11  ;;  %v507_v7 = vld [vmem:[#allocation7 + $0x710] sm:$0xff]  ;;  %v504_v9 = vld [vmem:[#allocation7 + $0x6f8] sm:$0xff] }
 0x139   :  { %720 = vmatpush1.msra.mxu0 %v307_v12  ;;  %791 = vmatpush1.msra.mxu1 %v435_v13  ;;  %v375_v10 = vld [vmem:[#allocation7 + $0x2f0] sm:$0xff]  ;;  %v372_v12 = vld [vmem:[#allocation7 + $0x2d8] sm:$0xff] }
 0x13a   :  { %721 = vmatprep.subr.mxu0 %v304_v14  ;;  %792 = vmatprep.subr.mxu1 %v432_v15  ;;  %v503_v11 = vld [vmem:[#allocation7 + $0x6f0] sm:$0xff]  ;;  %v500_v13 = vld [vmem:[#allocation7 + $0x6d8] sm:$0xff] }
 0x13b   :  { %722 = vmatpush1.msra.mxu0 %v303_v16  ;;  %793 = vmatpush1.msra.mxu1 %v431_v17  ;;  %v371_v14 = vld [vmem:[#allocation7 + $0x2d0] sm:$0xff]  ;;  %v368_v16 = vld [vmem:[#allocation7 + $0x2b8] sm:$0xff] }
 0x13c   :  { %723 = vmatprep.subr.mxu0 %v300_v18  ;;  %794 = vmatprep.subr.mxu1 %v428_v19  ;;  %v499_v15 = vld [vmem:[#allocation7 + $0x6d0] sm:$0xff]  ;;  %v496_v17 = vld [vmem:[#allocation7 + $0x6b8] sm:$0xff] }
 0x13d   :  { %724 = vmatpush1.msra.mxu0 %v299_v20  ;;  %795 = vmatpush1.msra.mxu1 %v427_v21  ;;  %v367_v18 = vld [vmem:[#allocation7 + $0x2b0] sm:$0xff]  ;;  %v364_v20 = vld [vmem:[#allocation7 + $0x298] sm:$0xff] }
 0x13e   :  { %725 = vmatprep.subr.mxu0 %v296_v22  ;;  %796 = vmatprep.subr.mxu1 %v424_v23  ;;  %v495_v19 = vld [vmem:[#allocation7 + $0x6b0] sm:$0xff]  ;;  %v492_v21 = vld [vmem:[#allocation7 + $0x698] sm:$0xff] }
 0x13f   :  { %726 = vmatpush1.msra.mxu0 %v295_v24  ;;  %797 = vmatpush1.msra.mxu1 %v423_v25  ;;  %v363_v22 = vld [vmem:[#allocation7 + $0x290] sm:$0xff]  ;;  %v360_v24 = vld [vmem:[#allocation7 + $0x278] sm:$0xff] }
 0x140   :  { %727 = vmatprep.subr.mxu0 %v292_v26  ;;  %798 = vmatprep.subr.mxu1 %v420_v27  ;;  %v491_v23 = vld [vmem:[#allocation7 + $0x690] sm:$0xff]  ;;  %v488_v25 = vld [vmem:[#allocation7 + $0x678] sm:$0xff] }
 0x141   :  { %728 = vmatpush1.msra.mxu0 %v291_v28  ;;  %799 = vmatpush1.msra.mxu1 %v419_v29  ;;  %v359_v26 = vld [vmem:[#allocation7 + $0x270] sm:$0xff]  ;;  %v356_v28 = vld [vmem:[#allocation7 + $0x258] sm:$0xff] }
 0x142   :  { %729 = vmatprep.subr.mxu0 %v288_v30  ;;  %800 = vmatprep.subr.mxu1 %v416_v31  ;;  %v487_v27 = vld [vmem:[#allocation7 + $0x670] sm:$0xff]  ;;  %v484_v29 = vld [vmem:[#allocation7 + $0x658] sm:$0xff] }
 0x143   :  { %730 = vmatpush1.msra.mxu0 %v287_v32  ;;  %801 = vmatpush1.msra.mxu1 %v415_v33  ;;  %v355_v30 = vld [vmem:[#allocation7 + $0x250] sm:$0xff]  ;;  %v352_v32 = vld [vmem:[#allocation7 + $0x238] sm:$0xff] }
 0x144   :  { %731 = vmatprep.subr.mxu0 %v284_v34  ;;  %802 = vmatprep.subr.mxu1 %v412_v35  ;;  %v483_v31 = vld [vmem:[#allocation7 + $0x650] sm:$0xff]  ;;  %v480_v33 = vld [vmem:[#allocation7 + $0x638] sm:$0xff] }
 0x145   :  { %732 = vmatpush1.msra.mxu0 %v283_v38  ;;  %803 = vmatpush1.msra.mxu1 %v411_v39  ;;  %v351_v34 = vld [vmem:[#allocation7 + $0x230] sm:$0xff]  ;;  %v348_v38 = vld [vmem:[#allocation7 + $0x218] sm:$0xff] }
 0x146   :  { %733 = vmatprep.subr.mxu0 %v408_v40  ;;  %804 = vmatprep.subr.mxu1 %v536_v41  ;;  %v479_v35 = vld [vmem:[#allocation7 + $0x630] sm:$0xff]  ;;  %v476_v39 = vld [vmem:[#allocation7 + $0x618] sm:$0xff] }
 0x147   :  { %734 = vmatpush2.msra.mxu0 %v407_v42  ;;  %805 = vmatpush2.msra.mxu1 %v535_v43  ;;  %v347_v40 = vld [vmem:[#allocation7 + $0x210] sm:$0xff]  ;;  %v905_v42 = vld [vmem:[#allocation7 + $0x9e8] sm:$0xff]  ;;  %v904_v43 = vld [vmem:[#allocation7 + $0x9e0] sm:$0xff] }
 0x148   :  { %735 = vmatprep.subr.mxu0 %v404_v44  ;;  %806 = vmatprep.subr.mxu1 %v532_v45  ;;  %v475_v41 = vld [vmem:[#allocation7 + $0x610] sm:$0xff]  ;;  %v901_v44 = vld [vmem:[#allocation7 + $0x9c8] sm:$0xff]  ;;  %v900_v45 = vld [vmem:[#allocation7 + $0x9c0] sm:$0xff] }
 0x149   :  { %736 = vmatpush2.msra.mxu0 %v403_v46  ;;  %807 = vmatpush2.msra.mxu1 %v531_v47  ;;  %v897_v46 = vld [vmem:[#allocation7 + $0x9a8] sm:$0xff]  ;;  %v896_v47 = vld [vmem:[#allocation7 + $0x9a0] sm:$0xff] }
 0x14a   :  { %737 = vmatprep.subr.mxu0 %v400_v48  ;;  %808 = vmatprep.subr.mxu1 %v528_v49  ;;  %v893_v48 = vld [vmem:[#allocation7 + $0x988] sm:$0xff]  ;;  %v892_v49 = vld [vmem:[#allocation7 + $0x980] sm:$0xff] }
 0x14b   :  { %738 = vmatpush2.msra.mxu0 %v399_v50  ;;  %809 = vmatpush2.msra.mxu1 %v527_v51  ;;  %v1033_v50 = vld [vmem:[#allocation7 + $0xde8] sm:$0xff] }
 0x14c   :  { %739 = vmatprep.subr.mxu0 %v396_v52  ;;  %810 = vmatprep.subr.mxu1 %v524_v53  ;;  %v889_v51 = vld [vmem:[#allocation7 + $0x968] sm:$0xff]  ;;  %v1032_v52 = vld [vmem:[#allocation7 + $0xde0] sm:$0xff] }
 0x14d   :  { %740 = vmatpush2.msra.mxu0 %v395_v54  ;;  %811 = vmatpush2.msra.mxu1 %v523_v55  ;;  %v885_v53 = vld [vmem:[#allocation7 + $0x948] sm:$0xff]  ;;  %v1028_v54 = vld [vmem:[#allocation7 + $0xdc0] sm:$0xff] }
 0x14e   :  { %741 = vmatprep.subr.mxu0 %v392_v56  ;;  %812 = vmatprep.subr.mxu1 %v520_v57  ;;  %v884_v55 = vld [vmem:[#allocation7 + $0x940] sm:$0xff]  ;;  %v1025_v56 = vld [vmem:[#allocation7 + $0xda8] sm:$0xff] }
 0x14f   :  { %742 = vmatpush2.msra.mxu0 %v391_v58  ;;  %813 = vmatpush2.msra.mxu1 %v519_v59  ;;  %v881_v57 = vld [vmem:[#allocation7 + $0x928] sm:$0xff]  ;;  %v1024_v58 = vld [vmem:[#allocation7 + $0xda0] sm:$0xff] }
 0x150   :  { %743 = vmatprep.subr.mxu0 %v388_v60  ;;  %814 = vmatprep.subr.mxu1 %v516_v61  ;;  %v880_v59 = vld [vmem:[#allocation7 + $0x920] sm:$0xff]  ;;  %v1021_v60 = vld [vmem:[#allocation7 + $0xd88] sm:$0xff] }
 0x151   :  { %744 = vmatpush2.msra.mxu0 %v387_v62  ;;  %815 = vmatpush2.msra.mxu1 %v515_v63  ;;  %v877_v61 = vld [vmem:[#allocation7 + $0x908] sm:$0xff]  ;;  %v1020_v62 = vld [vmem:[#allocation7 + $0xd80] sm:$0xff] }
 0x152   :  { %745 = vmatprep.subr.mxu0 %v384_v0  ;;  %816 = vmatprep.subr.mxu1 %v512_v1  ;;  %v876_v63 = vld [vmem:[#allocation7 + $0x900] sm:$0xff]  ;;  %v1017_v0 = vld [vmem:[#allocation7 + $0xd68] sm:$0xff] }
 0x153   :  { %746 = vmatpush2.msra.mxu0 %v383_v2  ;;  %817 = vmatpush2.msra.mxu1 %v511_v3  ;;  %v873_v1 = vld [vmem:[#allocation7 + $0x8e8] sm:$0xff]  ;;  %v1016_v2 = vld [vmem:[#allocation7 + $0xd60] sm:$0xff] }
 0x154   :  { %747 = vmatprep.subr.mxu0 %v380_v4  ;;  %818 = vmatprep.subr.mxu1 %v508_v5  ;;  %v872_v3 = vld [vmem:[#allocation7 + $0x8e0] sm:$0xff]  ;;  %v1013_v4 = vld [vmem:[#allocation7 + $0xd48] sm:$0xff] }
 0x155   :  { %748 = vmatpush2.msra.mxu0 %v379_v6  ;;  %819 = vmatpush2.msra.mxu1 %v507_v7  ;;  %v869_v5 = vld [vmem:[#allocation7 + $0x8c8] sm:$0xff]  ;;  %v1012_v6 = vld [vmem:[#allocation7 + $0xd40] sm:$0xff] }
 0x156   :  { %749 = vmatprep.subr.mxu0 %v376_v8  ;;  %820 = vmatprep.subr.mxu1 %v504_v9  ;;  %v868_v7 = vld [vmem:[#allocation7 + $0x8c0] sm:$0xff]  ;;  %v1009_v8 = vld [vmem:[#allocation7 + $0xd28] sm:$0xff] }
 0x157   :  { %750 = vmatpush2.msra.mxu0 %v375_v10  ;;  %821 = vmatpush2.msra.mxu1 %v503_v11  ;;  %v865_v9 = vld [vmem:[#allocation7 + $0x8a8] sm:$0xff]  ;;  %v1008_v10 = vld [vmem:[#allocation7 + $0xd20] sm:$0xff] }
 0x158   :  { %751 = vmatprep.subr.mxu0 %v372_v12  ;;  %822 = vmatprep.subr.mxu1 %v500_v13  ;;  %v864_v11 = vld [vmem:[#allocation7 + $0x8a0] sm:$0xff]  ;;  %v1005_v12 = vld [vmem:[#allocation7 + $0xd08] sm:$0xff] }
 0x159   :  { %752 = vmatpush2.msra.mxu0 %v371_v14  ;;  %823 = vmatpush2.msra.mxu1 %v499_v15  ;;  %v861_v13 = vld [vmem:[#allocation7 + $0x888] sm:$0xff]  ;;  %v1004_v14 = vld [vmem:[#allocation7 + $0xd00] sm:$0xff] }
 0x15a   :  { %753 = vmatprep.subr.mxu0 %v368_v16  ;;  %824 = vmatprep.subr.mxu1 %v496_v17  ;;  %v860_v15 = vld [vmem:[#allocation7 + $0x880] sm:$0xff]  ;;  %v1001_v16 = vld [vmem:[#allocation7 + $0xce8] sm:$0xff] }
 0x15b   :  { %754 = vmatpush2.msra.mxu0 %v367_v18  ;;  %825 = vmatpush2.msra.mxu1 %v495_v19  ;;  %v857_v17 = vld [vmem:[#allocation7 + $0x868] sm:$0xff]  ;;  %v1000_v18 = vld [vmem:[#allocation7 + $0xce0] sm:$0xff] }
 0x15c   :  { %755 = vmatprep.subr.mxu0 %v364_v20  ;;  %826 = vmatprep.subr.mxu1 %v492_v21  ;;  %v856_v19 = vld [vmem:[#allocation7 + $0x860] sm:$0xff]  ;;  %v997_v20 = vld [vmem:[#allocation7 + $0xcc8] sm:$0xff] }
 0x15d   :  { %756 = vmatpush2.msra.mxu0 %v363_v22  ;;  %827 = vmatpush2.msra.mxu1 %v491_v23  ;;  %v853_v21 = vld [vmem:[#allocation7 + $0x848] sm:$0xff]  ;;  %v996_v22 = vld [vmem:[#allocation7 + $0xcc0] sm:$0xff] }
 0x15e   :  { %757 = vmatprep.subr.mxu0 %v360_v24  ;;  %828 = vmatprep.subr.mxu1 %v488_v25  ;;  %v852_v23 = vld [vmem:[#allocation7 + $0x840] sm:$0xff]  ;;  %v993_v24 = vld [vmem:[#allocation7 + $0xca8] sm:$0xff] }
 0x15f   :  { %758 = vmatpush2.msra.mxu0 %v359_v26  ;;  %829 = vmatpush2.msra.mxu1 %v487_v27  ;;  %v849_v25 = vld [vmem:[#allocation7 + $0x828] sm:$0xff]  ;;  %v992_v26 = vld [vmem:[#allocation7 + $0xca0] sm:$0xff] }
 0x160   :  { %759 = vmatprep.subr.mxu0 %v356_v28  ;;  %830 = vmatprep.subr.mxu1 %v484_v29  ;;  %v848_v27 = vld [vmem:[#allocation7 + $0x820] sm:$0xff]  ;;  %v989_v28 = vld [vmem:[#allocation7 + $0xc88] sm:$0xff] }
 0x161   :  { %760 = vmatpush2.msra.mxu0 %v355_v30  ;;  %831 = vmatpush2.msra.mxu1 %v483_v31  ;;  %v845_v29 = vld [vmem:[#allocation7 + $0x808] sm:$0xff]  ;;  %v988_v30 = vld [vmem:[#allocation7 + $0xc80] sm:$0xff] }
 0x162   :  { %761 = vmatprep.subr.mxu0 %v352_v32  ;;  %832 = vmatprep.subr.mxu1 %v480_v33  ;;  %v844_v31 = vld [vmem:[#allocation7 + $0x800] sm:$0xff]  ;;  %v985_v32 = vld [vmem:[#allocation7 + $0xc68] sm:$0xff] }
 0x163   :  { %762 = vmatpush2.msra.mxu0 %v351_v34  ;;  %833 = vmatpush2.msra.mxu1 %v479_v35  ;;  %v969_v33 = vld [vmem:[#allocation7 + $0xbe8] sm:$0xff]  ;;  %v984_v34 = vld [vmem:[#allocation7 + $0xc60] sm:$0xff] }
 0x164   :  { %763 = vmatprep.subr.mxu0 %v348_v38  ;;  %834 = vmatprep.subr.mxu1 %v476_v39  ;;  %v968_v35 = vld [vmem:[#allocation7 + $0xbe0] sm:$0xff]  ;;  %v981_v38 = vld [vmem:[#allocation7 + $0xc48] sm:$0xff] }
 0x165   :  { %764 = vmatpush2.msra.mxu0 %v347_v40  ;;  %835 = vmatpush2.msra.mxu1 %v475_v41  ;;  %v965_v39 = vld [vmem:[#allocation7 + $0xbc8] sm:$0xff]  ;;  %v980_v40 = vld [vmem:[#allocation7 + $0xc40] sm:$0xff] }
 0x166   :  { %766 = vmatmul.mubr.f32.vlgmr.msra.gmra.mxu0 %v1947_v36  ;;  %837 = vmatmul.mubr.f32.vlgmr.msra.gmra.mxu1 %v1949_v37  ;;  %v888_v36 = vld [vmem:[#allocation7 + $0x960] sm:$0xff]  ;;  %v1029_v37 = vld [vmem:[#allocation7 + $0xdc8] sm:$0xff] }
 0x167   :  { %1123 = vmatprep.subr.mxu0 %v905_v42  ;;  %1194 = vmatprep.subr.mxu1 %v1033_v50  ;;  %v964_v41 = vld [vmem:[#allocation7 + $0xbc0] sm:$0xff]  ;;  %v977_v42 = vld [vmem:[#allocation7 + $0xc28] sm:$0xff] }
 0x168   :  { %1124 = vmatpush1.msra.mxu0 %v904_v43  ;;  %1195 = vmatpush1.msra.mxu1 %v1032_v52  ;;  %v961_v43 = vld [vmem:[#allocation7 + $0xba8] sm:$0xff]  ;;  %v1096_v52 = vld [vmem:[#allocation7 + $0xfe0] sm:$0xff] }
 0x169   :  { %1125 = vmatprep.subr.mxu0 %v901_v44  ;;  %1196 = vmatprep.subr.mxu1 %v1029_v37  ;;  %v976_v44 = vld [vmem:[#allocation7 + $0xc20] sm:$0xff]  ;;  %v1097_v50 = vld [vmem:[#allocation7 + $0xfe8] sm:$0xff] }
 0x16a   :  { %1126 = vmatpush1.msra.mxu0 %v900_v45  ;;  %1197 = vmatpush1.msra.mxu1 %v1028_v54  ;;  %v960_v45 = vld [vmem:[#allocation7 + $0xba0] sm:$0xff]  ;;  %v1093_v37 = vld [vmem:[#allocation7 + $0xfc8] sm:$0xff] }
 0x16b   :  { %1127 = vmatprep.subr.mxu0 %v897_v46  ;;  %1198 = vmatprep.subr.mxu1 %v1025_v56  ;;  %v973_v46 = vld [vmem:[#allocation7 + $0xc08] sm:$0xff]  ;;  %v1092_v54 = vld [vmem:[#allocation7 + $0xfc0] sm:$0xff] }
 0x16c   :  { %1128 = vmatpush1.msra.mxu0 %v896_v47  ;;  %1199 = vmatpush1.msra.mxu1 %v1024_v58  ;;  %v957_v47 = vld [vmem:[#allocation7 + $0xb88] sm:$0xff]  ;;  %v1088_v58 = vld [vmem:[#allocation7 + $0xfa0] sm:$0xff] }
 0x16d   :  { %1129 = vmatprep.subr.mxu0 %v893_v48  ;;  %1200 = vmatprep.subr.mxu1 %v1021_v60  ;;  %v972_v48 = vld [vmem:[#allocation7 + $0xc00] sm:$0xff]  ;;  %v1089_v56 = vld [vmem:[#allocation7 + $0xfa8] sm:$0xff] }
 0x16e   :  { %1130 = vmatpush1.msra.mxu0 %v892_v49  ;;  %1201 = vmatpush1.msra.mxu1 %v1020_v62  ;;  %v956_v49 = vld [vmem:[#allocation7 + $0xb80] sm:$0xff]  ;;  %v1085_v60 = vld [vmem:[#allocation7 + $0xf88] sm:$0xff] }
 0x16f   :  { %1131 = vmatprep.subr.mxu0 %v889_v51  ;;  %1202 = vmatprep.subr.mxu1 %v1017_v0  ;;  %v953_v51 = vld [vmem:[#allocation7 + $0xb68] sm:$0xff]  ;;  %v1084_v62 = vld [vmem:[#allocation7 + $0xf80] sm:$0xff] }
 0x170   :  { %1132 = vmatpush1.msra.mxu0 %v888_v36  ;;  %1203 = vmatpush1.msra.mxu1 %v1016_v2  ;;  %v952_v36 = vld [vmem:[#allocation7 + $0xb60] sm:$0xff]  ;;  %v1081_v0 = vld [vmem:[#allocation7 + $0xf68] sm:$0xff] }
 0x171   :  { %1133 = vmatprep.subr.mxu0 %v885_v53  ;;  %1204 = vmatprep.subr.mxu1 %v1013_v4  ;;  %v949_v53 = vld [vmem:[#allocation7 + $0xb48] sm:$0xff]  ;;  %v1080_v2 = vld [vmem:[#allocation7 + $0xf60] sm:$0xff] }
 0x172   :  { %1134 = vmatpush1.msra.mxu0 %v884_v55  ;;  %1205 = vmatpush1.msra.mxu1 %v1012_v6  ;;  %v948_v55 = vld [vmem:[#allocation7 + $0xb40] sm:$0xff]  ;;  %v1077_v4 = vld [vmem:[#allocation7 + $0xf48] sm:$0xff] }
 0x173   :  { %1135 = vmatprep.subr.mxu0 %v881_v57  ;;  %1206 = vmatprep.subr.mxu1 %v1009_v8  ;;  %v945_v57 = vld [vmem:[#allocation7 + $0xb28] sm:$0xff]  ;;  %v1076_v6 = vld [vmem:[#allocation7 + $0xf40] sm:$0xff] }
 0x174   :  { %1136 = vmatpush1.msra.mxu0 %v880_v59  ;;  %1207 = vmatpush1.msra.mxu1 %v1008_v10  ;;  %v944_v59 = vld [vmem:[#allocation7 + $0xb20] sm:$0xff]  ;;  %v1073_v8 = vld [vmem:[#allocation7 + $0xf28] sm:$0xff] }
 0x175   :  { %1137 = vmatprep.subr.mxu0 %v877_v61  ;;  %1208 = vmatprep.subr.mxu1 %v1005_v12  ;;  %v941_v61 = vld [vmem:[#allocation7 + $0xb08] sm:$0xff]  ;;  %v1072_v10 = vld [vmem:[#allocation7 + $0xf20] sm:$0xff] }
 0x176   :  { %1138 = vmatpush1.msra.mxu0 %v876_v63  ;;  %1209 = vmatpush1.msra.mxu1 %v1004_v14  ;;  %v940_v63 = vld [vmem:[#allocation7 + $0xb00] sm:$0xff]  ;;  %v1069_v12 = vld [vmem:[#allocation7 + $0xf08] sm:$0xff] }
 0x177   :  { %1139 = vmatprep.subr.mxu0 %v873_v1  ;;  %1210 = vmatprep.subr.mxu1 %v1001_v16  ;;  %v937_v1 = vld [vmem:[#allocation7 + $0xae8] sm:$0xff]  ;;  %v1068_v14 = vld [vmem:[#allocation7 + $0xf00] sm:$0xff] }
 0x178   :  { %1140 = vmatpush1.msra.mxu0 %v872_v3  ;;  %1211 = vmatpush1.msra.mxu1 %v1000_v18  ;;  %v936_v3 = vld [vmem:[#allocation7 + $0xae0] sm:$0xff]  ;;  %v1065_v16 = vld [vmem:[#allocation7 + $0xee8] sm:$0xff] }
 0x179   :  { %1141 = vmatprep.subr.mxu0 %v869_v5  ;;  %1212 = vmatprep.subr.mxu1 %v997_v20  ;;  %v933_v5 = vld [vmem:[#allocation7 + $0xac8] sm:$0xff]  ;;  %v1064_v18 = vld [vmem:[#allocation7 + $0xee0] sm:$0xff] }
 0x17a   :  { %1142 = vmatpush1.msra.mxu0 %v868_v7  ;;  %1213 = vmatpush1.msra.mxu1 %v996_v22  ;;  %v932_v7 = vld [vmem:[#allocation7 + $0xac0] sm:$0xff]  ;;  %v1061_v20 = vld [vmem:[#allocation7 + $0xec8] sm:$0xff] }
 0x17b   :  { %1143 = vmatprep.subr.mxu0 %v865_v9  ;;  %1214 = vmatprep.subr.mxu1 %v993_v24  ;;  %v929_v9 = vld [vmem:[#allocation7 + $0xaa8] sm:$0xff]  ;;  %v1060_v22 = vld [vmem:[#allocation7 + $0xec0] sm:$0xff] }
 0x17c   :  { %1144 = vmatpush1.msra.mxu0 %v864_v11  ;;  %1215 = vmatpush1.msra.mxu1 %v992_v26  ;;  %v928_v11 = vld [vmem:[#allocation7 + $0xaa0] sm:$0xff]  ;;  %v1057_v24 = vld [vmem:[#allocation7 + $0xea8] sm:$0xff] }
 0x17d   :  { %1145 = vmatprep.subr.mxu0 %v861_v13  ;;  %1216 = vmatprep.subr.mxu1 %v989_v28  ;;  %v925_v13 = vld [vmem:[#allocation7 + $0xa88] sm:$0xff]  ;;  %v1056_v26 = vld [vmem:[#allocation7 + $0xea0] sm:$0xff] }
 0x17e   :  { %1146 = vmatpush1.msra.mxu0 %v860_v15  ;;  %1217 = vmatpush1.msra.mxu1 %v988_v30  ;;  %v924_v15 = vld [vmem:[#allocation7 + $0xa80] sm:$0xff]  ;;  %v1053_v28 = vld [vmem:[#allocation7 + $0xe88] sm:$0xff] }
 0x17f   :  { %1147 = vmatprep.subr.mxu0 %v857_v17  ;;  %1218 = vmatprep.subr.mxu1 %v985_v32  ;;  %v921_v17 = vld [vmem:[#allocation7 + $0xa68] sm:$0xff]  ;;  %v1052_v30 = vld [vmem:[#allocation7 + $0xe80] sm:$0xff] }
 0x180   :  { %1148 = vmatpush1.msra.mxu0 %v856_v19  ;;  %1219 = vmatpush1.msra.mxu1 %v984_v34  ;;  %v920_v19 = vld [vmem:[#allocation7 + $0xa60] sm:$0xff]  ;;  %v1049_v32 = vld [vmem:[#allocation7 + $0xe68] sm:$0xff] }
 0x181   :  { %1149 = vmatprep.subr.mxu0 %v853_v21  ;;  %1220 = vmatprep.subr.mxu1 %v981_v38  ;;  %v917_v21 = vld [vmem:[#allocation7 + $0xa48] sm:$0xff]  ;;  %v1048_v34 = vld [vmem:[#allocation7 + $0xe60] sm:$0xff] }
 0x182   :  { %1150 = vmatpush1.msra.mxu0 %v852_v23  ;;  %1221 = vmatpush1.msra.mxu1 %v980_v40  ;;  %v916_v23 = vld [vmem:[#allocation7 + $0xa40] sm:$0xff] }
 0x183   :  { %1151 = vmatprep.subr.mxu0 %v849_v25  ;;  %1222 = vmatprep.subr.mxu1 %v977_v42  ;;  %v913_v25 = vld [vmem:[#allocation7 + $0xa28] sm:$0xff]  ;;  %v1044_v38 = vld [vmem:[#allocation7 + $0xe40] sm:$0xff] }
 0x184   :  { %1152 = vmatpush1.msra.mxu0 %v848_v27  ;;  %1223 = vmatpush1.msra.mxu1 %v976_v44  ;;  %v912_v27 = vld [vmem:[#allocation7 + $0xa20] sm:$0xff]  ;;  %v539_v44 = vlaneseq }
 0x185   :  { %1153 = vmatprep.subr.mxu0 %v845_v29  ;;  %1224 = vmatprep.subr.mxu1 %v973_v46  ;;  %v909_v29 = vld [vmem:[#allocation7 + $0xa08] sm:$0xff]  ;;  %v1040_v40 = vld [vmem:[#allocation7 + $0xe20] sm:$0xff] }
 0x186   :  { %1154 = vmatpush1.msra.mxu0 %v844_v31  ;;  %1225 = vmatpush1.msra.mxu1 %v972_v48  ;;  %v908_v31 = vld [vmem:[#allocation7 + $0xa00] sm:$0xff] }
 0x187   :  { %1155 = vmatprep.subr.mxu0 %v969_v33  ;;  %1226 = vmatprep.subr.mxu1 %v1097_v50  ;;  %v907_v33 = vld [vmem:[#allocation7 + $0x9f8] sm:$0xff]  ;;  %v1036_v42 = vld [vmem:[#allocation7 + $0xe00] sm:$0xff] }
 0x188   :  { %1156 = vmatpush2.msra.mxu0 %v968_v35  ;;  %1227 = vmatpush2.msra.mxu1 %v1096_v52  ;;  %v1045_v35 = vld [vmem:[#allocation7 + $0xe48] sm:$0xff] }
 0x189   :  { %1157 = vmatprep.subr.mxu0 %v965_v39  ;;  %1228 = vmatprep.subr.mxu1 %v1093_v37  ;;  %v1041_v39 = vld [vmem:[#allocation7 + $0xe28] sm:$0xff] }
 0x18a   :  { %1158 = vmatpush2.msra.mxu0 %v964_v41  ;;  %1229 = vmatpush2.msra.mxu1 %v1092_v54  ;;  %v1037_v41 = vld [vmem:[#allocation7 + $0xe08] sm:$0xff] }
 0x18b   :  { %1159 = vmatprep.subr.mxu0 %v961_v43  ;;  %1230 = vmatprep.subr.mxu1 %v1089_v56  ;;  %v1035_v43 = vld [vmem:[#allocation7 + $0xdf8] sm:$0xff] }
 0x18c   :  { %1160 = vmatpush2.msra.mxu0 %v960_v45  ;;  %1231 = vmatpush2.msra.mxu1 %v1088_v58  ;;  %v1955_v45 = vshrl.u32 %v539_v44, 7  ;;  %v903_v58 = vld [vmem:[#allocation7 + $0x9d8] sm:$0xff] }
 0x18d   :  { %1161 = vmatprep.subr.mxu0 %v957_v47  ;;  %1232 = vmatprep.subr.mxu1 %v1085_v60  ;;  %v1958_v47 = vld [vmem:[#allocation8] sm:$0xf]  ;;  %v899_v60 = vld [vmem:[#allocation7 + $0x9b8] sm:$0xff] }
 0x18e   :  { %1162 = vmatpush2.msra.mxu0 %v956_v49  ;;  %1233 = vmatpush2.msra.mxu1 %v1084_v62  ;;  %v541_v46 = vsub.s32 0, %v1955_v45  ;;  %v545_v48 = vsub.s32 1, %v1955_v45  ;;  %v895_v62 = vld [vmem:[#allocation7 + $0x998] sm:$0xff] }
 0x18f   :  { %1163 = vmatprep.subr.mxu0 %v953_v51  ;;  %1234 = vmatprep.subr.mxu1 %v1081_v0  ;;  %v891_v0 = vld [vmem:[#allocation7 + $0x978] sm:$0xff] }
 0x190   :  { %1164 = vmatpush2.msra.mxu0 %v952_v36  ;;  %1235 = vmatpush2.msra.mxu1 %v1080_v2  ;;  %v542_v49 = vrot.slane %v1958_v47, %v541_v46  ;;  %v546_v50 = vrot.slane %v1958_v47, %v545_v48  ;;  %v887_v2 = vld [vmem:[#allocation7 + $0x958] sm:$0xff] }
 0x191   :  { %1165 = vmatprep.subr.mxu0 %v949_v53  ;;  %1236 = vmatprep.subr.mxu1 %v1077_v4  ;;  %v883_v4 = vld [vmem:[#allocation7 + $0x938] sm:$0xff] }
 0x192   :  { %1166 = vmatpush2.msra.mxu0 %v948_v55  ;;  %1237 = vmatpush2.msra.mxu1 %v1076_v6  ;;  %v879_v6 = vld [vmem:[#allocation7 + $0x918] sm:$0xff] }
 0x193   :  { %1167 = vmatprep.subr.mxu0 %v945_v57  ;;  %1238 = vmatprep.subr.mxu1 %v1073_v8  ;;  %v906_v57 = vld [vmem:[#allocation7 + $0x9f0] sm:$0xff]  ;;  %v875_v8 = vld [vmem:[#allocation7 + $0x8f8] sm:$0xff] }
 0x194   :  { %1168 = vmatpush2.msra.mxu0 %v944_v59  ;;  %1239 = vmatpush2.msra.mxu1 %v1072_v10  ;;  %v902_v59 = vld [vmem:[#allocation7 + $0x9d0] sm:$0xff]  ;;  %v871_v10 = vld [vmem:[#allocation7 + $0x8d8] sm:$0xff] }
 0x195   :  { %1169 = vmatprep.subr.mxu0 %v941_v61  ;;  %1240 = vmatprep.subr.mxu1 %v1069_v12  ;;  %v898_v61 = vld [vmem:[#allocation7 + $0x9b0] sm:$0xff]  ;;  %v867_v12 = vld [vmem:[#allocation7 + $0x8b8] sm:$0xff] }
 0x196   :  { %1170 = vmatpush2.msra.mxu0 %v940_v63  ;;  %1241 = vmatpush2.msra.mxu1 %v1068_v14  ;;  %v894_v63 = vld [vmem:[#allocation7 + $0x990] sm:$0xff]  ;;  %v863_v14 = vld [vmem:[#allocation7 + $0x898] sm:$0xff] }
 0x197   :  { %1171 = vmatprep.subr.mxu0 %v937_v1  ;;  %1242 = vmatprep.subr.mxu1 %v1065_v16  ;;  %v890_v1 = vld [vmem:[#allocation7 + $0x970] sm:$0xff]  ;;  %v859_v16 = vld [vmem:[#allocation7 + $0x878] sm:$0xff] }
 0x198   :  { %1172 = vmatpush2.msra.mxu0 %v936_v3  ;;  %1243 = vmatpush2.msra.mxu1 %v1064_v18  ;;  %v886_v3 = vld [vmem:[#allocation7 + $0x950] sm:$0xff]  ;;  %v855_v18 = vld [vmem:[#allocation7 + $0x858] sm:$0xff] }
 0x199   :  { %1173 = vmatprep.subr.mxu0 %v933_v5  ;;  %1244 = vmatprep.subr.mxu1 %v1061_v20  ;;  %v882_v5 = vld [vmem:[#allocation7 + $0x930] sm:$0xff]  ;;  %v851_v20 = vld [vmem:[#allocation7 + $0x838] sm:$0xff] }
 0x19a   :  { %1174 = vmatpush2.msra.mxu0 %v932_v7  ;;  %1245 = vmatpush2.msra.mxu1 %v1060_v22  ;;  %v878_v7 = vld [vmem:[#allocation7 + $0x910] sm:$0xff]  ;;  %v847_v22 = vld [vmem:[#allocation7 + $0x818] sm:$0xff] }
 0x19b   :  { %1175 = vmatprep.subr.mxu0 %v929_v9  ;;  %1246 = vmatprep.subr.mxu1 %v1057_v24  ;;  %v874_v9 = vld [vmem:[#allocation7 + $0x8f0] sm:$0xff]  ;;  %v971_v24 = vld [vmem:[#allocation7 + $0xbf8] sm:$0xff] }
 0x19c   :  { %1176 = vmatpush2.msra.mxu0 %v928_v11  ;;  %1247 = vmatpush2.msra.mxu1 %v1056_v26  ;;  %v870_v11 = vld [vmem:[#allocation7 + $0x8d0] sm:$0xff]  ;;  %v967_v26 = vld [vmem:[#allocation7 + $0xbd8] sm:$0xff] }
 0x19d   :  { %1177 = vmatprep.subr.mxu0 %v925_v13  ;;  %1248 = vmatprep.subr.mxu1 %v1053_v28  ;;  %v866_v13 = vld [vmem:[#allocation7 + $0x8b0] sm:$0xff]  ;;  %v963_v28 = vld [vmem:[#allocation7 + $0xbb8] sm:$0xff] }
 0x19e   :  { %1178 = vmatpush2.msra.mxu0 %v924_v15  ;;  %1249 = vmatpush2.msra.mxu1 %v1052_v30  ;;  %v862_v15 = vld [vmem:[#allocation7 + $0x890] sm:$0xff]  ;;  %v959_v30 = vld [vmem:[#allocation7 + $0xb98] sm:$0xff] }
 0x19f   :  { %1179 = vmatprep.subr.mxu0 %v921_v17  ;;  %1250 = vmatprep.subr.mxu1 %v1049_v32  ;;  %v858_v17 = vld [vmem:[#allocation7 + $0x870] sm:$0xff]  ;;  %v955_v32 = vld [vmem:[#allocation7 + $0xb78] sm:$0xff] }
 0x1a0   :  { %1180 = vmatpush2.msra.mxu0 %v920_v19  ;;  %1251 = vmatpush2.msra.mxu1 %v1048_v34  ;;  %v854_v19 = vld [vmem:[#allocation7 + $0x850] sm:$0xff]  ;;  %v951_v34 = vld [vmem:[#allocation7 + $0xb58] sm:$0xff] }
 0x1a1   :  { %1181 = vmatprep.subr.mxu0 %v917_v21  ;;  %1252 = vmatprep.subr.mxu1 %v1045_v35  ;;  %v850_v21 = vld [vmem:[#allocation7 + $0x830] sm:$0xff]  ;;  %v935_v44 = vld [vmem:[#allocation7 + $0xad8] sm:$0xff] }
 0x1a2   :  { %1182 = vmatpush2.msra.mxu0 %v916_v23  ;;  %1253 = vmatpush2.msra.mxu1 %v1044_v38  ;;  %v846_v23 = vld [vmem:[#allocation7 + $0x810] sm:$0xff]  ;;  %v947_v38 = vld [vmem:[#allocation7 + $0xb38] sm:$0xff] }
 0x1a3   :  { %1183 = vmatprep.subr.mxu0 %v913_v25  ;;  %1254 = vmatprep.subr.mxu1 %v1041_v39  ;;  %v970_v25 = vld [vmem:[#allocation7 + $0xbf0] sm:$0xff] }
 0x1a4   :  { %1184 = vmatpush2.msra.mxu0 %v912_v27  ;;  %1255 = vmatpush2.msra.mxu1 %v1040_v40  ;;  %v966_v27 = vld [vmem:[#allocation7 + $0xbd0] sm:$0xff]  ;;  %v943_v40 = vld [vmem:[#allocation7 + $0xb18] sm:$0xff] }
 0x1a5   :  { %1185 = vmatprep.subr.mxu0 %v909_v29  ;;  %1256 = vmatprep.subr.mxu1 %v1037_v41  ;;  %v962_v29 = vld [vmem:[#allocation7 + $0xbb0] sm:$0xff] }
 0x1a6   :  { %1186 = vmatpush2.msra.mxu0 %v908_v31  ;;  %1257 = vmatpush2.msra.mxu1 %v1036_v42  ;;  %v958_v31 = vld [vmem:[#allocation7 + $0xb90] sm:$0xff]  ;;  %v939_v42 = vld [vmem:[#allocation7 + $0xaf8] sm:$0xff] }
 0x1a7   :  { %1265 = vmatprep.subr.mxu0 %v907_v33  ;;  %1336 = vmatprep.subr.mxu1 %v1035_v43  ;;  %v954_v33 = vld [vmem:[#allocation7 + $0xb70] sm:$0xff] }
 0x1a8   :  { %v950_v35 = vld [vmem:[#allocation7 + $0xb50] sm:$0xff] }
 0x1a9   :  { %v946_v39 = vld [vmem:[#allocation7 + $0xb30] sm:$0xff] }
 0x1aa   :  { %v942_v41 = vld [vmem:[#allocation7 + $0xb10] sm:$0xff] }
 0x1ab   :  { %v938_v43 = vld [vmem:[#allocation7 + $0xaf0] sm:$0xff] }
 0x1e5   :  { %v625_v51 = vpop.f32.mrf.mxu0  ;;  %v696_v52 = vpop.f32.mrf.mxu1 }
 0x1e6   :  { %v626_v36 = vadd.f32 %v625_v51, %v542_v49  ;;  %v934_v49 = vld [vmem:[#allocation7 + $0xad0] sm:$0xff] }
 0x1e7   :  { %v627_v37 = vpop.f32.mrf.mxu0  ;;  %v698_v54 = vpop.f32.mrf.mxu1  ;;  %v930_v51 = vld [vmem:[#allocation7 + $0xab0] sm:$0xff] }
 0x1e8   :  { %v628_v53 = vadd.f32 %v627_v37, %v546_v50  ;;  %v1967_v56 = vadd.f32 %v696_v52, %v626_v36  ;;  %v931_v50 = vld [vmem:[#allocation7 + $0xab8] sm:$0xff]  ;;  %v549_v36 = vsub.s32 2, %v1955_v45  ;;  %v926_v37 = vld [vmem:[#allocation7 + $0xa90] sm:$0xff] }
 0x1e9   :  { %v927_v52 = vld [vmem:[#allocation7 + $0xa98] sm:$0xff] }
 0x1ea   :  { %v699_v55 = vadd.f32 %v698_v54, %v628_v53  ;;  %v553_v53 = vsub.s32 3, %v1955_v45  ;;  %v923_v54 = vld [vmem:[#allocation7 + $0xa78] sm:$0xff] }
 0x1ec   :  { %1187 = vmatprep.mubr.f32.mxu0 %v699_v55 }
 0x1ed   :  { %1188 = vmatmul.mubr.f32.vlgmr.msra.gmra.mxu0 %v1967_v56 }
 0x1ee   :  { %1266 = vmatpush1.msra.mxu0 %v906_v57  ;;  %1329 = vmatprep.mubr.f32.mxu0 %v699_v55  ;;  %v922_v55 = vld [vmem:[#allocation7 + $0xa70] sm:$0xff]  ;;  %v550_v57 = vrot.slane %v1958_v47, %v549_v36 }
 0x1ef   :  { %1267 = vmatprep.subr.mxu0 %v903_v58  ;;  %v919_v58 = vld [vmem:[#allocation7 + $0xa58] sm:$0xff] }
 0x1f0   :  { %1268 = vmatpush1.msra.mxu0 %v902_v59  ;;  %v554_v59 = vrot.slane %v1958_v47, %v553_v53  ;;  %v1034_v47 = vld [vmem:[#allocation7 + $0xdf0] sm:$0xff] }
 0x1f1   :  { %1269 = vmatprep.subr.mxu0 %v899_v60  ;;  %v918_v60 = vld [vmem:[#allocation7 + $0xa50] sm:$0xff] }
 0x1f2   :  { %1270 = vmatpush1.msra.mxu0 %v898_v61 }
 0x1f3   :  { %1271 = vmatprep.subr.mxu0 %v895_v62 }
 0x1f4   :  { %1272 = vmatpush1.msra.mxu0 %v894_v63  ;;  %v915_v63 = vld [vmem:[#allocation7 + $0xa38] sm:$0xff] }
 0x1f5   :  { %1273 = vmatprep.subr.mxu0 %v891_v0  ;;  %v914_v0 = vld [vmem:[#allocation7 + $0xa30] sm:$0xff] }
 0x1f6   :  { %1274 = vmatpush1.msra.mxu0 %v890_v1 }
 0x1f7   :  { %1275 = vmatprep.subr.mxu0 %v887_v2 }
 0x1f8   :  { %1276 = vmatpush1.msra.mxu0 %v886_v3  ;;  %v911_v3 = vld [vmem:[#allocation7 + $0xa18] sm:$0xff] }
 0x1f9   :  { %1277 = vmatprep.subr.mxu0 %v883_v4 }
 0x1fa   :  { %1278 = vmatpush1.msra.mxu0 %v882_v5  ;;  %v910_v5 = vld [vmem:[#allocation7 + $0xa10] sm:$0xff] }
 0x1fb   :  { %1279 = vmatprep.subr.mxu0 %v879_v6 }
 0x1fc   :  { %1280 = vmatpush1.msra.mxu0 %v878_v7 }
 0x1fd   :  { %1281 = vmatprep.subr.mxu0 %v875_v8 }
 0x1fe   :  { %1282 = vmatpush1.msra.mxu0 %v874_v9  ;;  %v1031_v9 = vld [vmem:[#allocation7 + $0xdd8] sm:$0xff] }
 0x1ff   :  { %1283 = vmatprep.subr.mxu0 %v871_v10  ;;  %v1030_v10 = vld [vmem:[#allocation7 + $0xdd0] sm:$0xff] }
 0x200   :  { %1284 = vmatpush1.msra.mxu0 %v870_v11  ;;  %v1027_v11 = vld [vmem:[#allocation7 + $0xdb8] sm:$0xff] }
 0x201   :  { %1285 = vmatprep.subr.mxu0 %v867_v12  ;;  %v1026_v12 = vld [vmem:[#allocation7 + $0xdb0] sm:$0xff] }
 0x202   :  { %1286 = vmatpush1.msra.mxu0 %v866_v13  ;;  %v1438_v13 = vld [vmem:[#allocation10 + $0xf8] sm:$0xff] }
 0x203   :  { %1287 = vmatprep.subr.mxu0 %v863_v14  ;;  %v1422_v14 = vld [vmem:[#allocation10 + $0x78] sm:$0xff] }
 0x204   :  { %1288 = vmatpush1.msra.mxu0 %v862_v15  ;;  %v1437_v15 = vld [vmem:[#allocation10 + $0xf0] sm:$0xff] }
 0x205   :  { %1289 = vmatprep.subr.mxu0 %v859_v16  ;;  %v1023_v16 = vld [vmem:[#allocation7 + $0xd98] sm:$0xff] }
 0x206   :  { %1290 = vmatpush1.msra.mxu0 %v858_v17  ;;  %v1421_v17 = vld [vmem:[#allocation10 + $0x70] sm:$0xff] }
 0x207   :  { %1291 = vmatprep.subr.mxu0 %v855_v18  ;;  %v1022_v18 = vld [vmem:[#allocation7 + $0xd90] sm:$0xff] }
 0x208   :  { %1292 = vmatpush1.msra.mxu0 %v854_v19  ;;  %v1019_v19 = vld [vmem:[#allocation7 + $0xd78] sm:$0xff] }
 0x209   :  { %1293 = vmatprep.subr.mxu0 %v851_v20  ;;  %v1420_v20 = vld [vmem:[#allocation10 + $0x68] sm:$0xff] }
 0x20a   :  { %1294 = vmatpush1.msra.mxu0 %v850_v21  ;;  %v1018_v21 = vld [vmem:[#allocation7 + $0xd70] sm:$0xff] }
 0x20b   :  { %1295 = vmatprep.subr.mxu0 %v847_v22  ;;  %v1435_v22 = vld [vmem:[#allocation10 + $0xe0] sm:$0xff] }
 0x20c   :  { %1296 = vmatpush1.msra.mxu0 %v846_v23  ;;  %v1015_v23 = vld [vmem:[#allocation7 + $0xd58] sm:$0xff] }
 0x20d   :  { %1297 = vmatprep.subr.mxu0 %v971_v24  ;;  %v1419_v24 = vld [vmem:[#allocation10 + $0x60] sm:$0xff] }
 0x20e   :  { %1298 = vmatpush2.msra.mxu0 %v970_v25  ;;  %v1014_v25 = vld [vmem:[#allocation7 + $0xd50] sm:$0xff] }
 0x20f   :  { %1299 = vmatprep.subr.mxu0 %v967_v26  ;;  %v1434_v26 = vld [vmem:[#allocation10 + $0xd8] sm:$0xff] }
 0x210   :  { %1300 = vmatpush2.msra.mxu0 %v966_v27  ;;  %v1011_v27 = vld [vmem:[#allocation7 + $0xd38] sm:$0xff] }
 0x211   :  { %1301 = vmatprep.subr.mxu0 %v963_v28  ;;  %v1418_v28 = vld [vmem:[#allocation10 + $0x58] sm:$0xff] }
 0x212   :  { %1302 = vmatpush2.msra.mxu0 %v962_v29  ;;  %v1010_v29 = vld [vmem:[#allocation7 + $0xd30] sm:$0xff] }
 0x213   :  { %1303 = vmatprep.subr.mxu0 %v959_v30  ;;  %v1433_v30 = vld [vmem:[#allocation10 + $0xd0] sm:$0xff] }
 0x214   :  { %1304 = vmatpush2.msra.mxu0 %v958_v31  ;;  %v1007_v31 = vld [vmem:[#allocation7 + $0xd18] sm:$0xff] }
 0x215   :  { %1305 = vmatprep.subr.mxu0 %v955_v32  ;;  %v1417_v32 = vld [vmem:[#allocation10 + $0x50] sm:$0xff] }
 0x216   :  { %1306 = vmatpush2.msra.mxu0 %v954_v33  ;;  %v1006_v33 = vld [vmem:[#allocation7 + $0xd10] sm:$0xff] }
 0x217   :  { %1307 = vmatprep.subr.mxu0 %v951_v34  ;;  %v1432_v34 = vld [vmem:[#allocation10 + $0xc8] sm:$0xff] }
 0x218   :  { %1308 = vmatpush2.msra.mxu0 %v950_v35  ;;  %v1003_v35 = vld [vmem:[#allocation7 + $0xcf8] sm:$0xff] }
 0x219   :  { %1309 = vmatprep.subr.mxu0 %v947_v38  ;;  %v1416_v38 = vld [vmem:[#allocation10 + $0x48] sm:$0xff] }
 0x21a   :  { %1310 = vmatpush2.msra.mxu0 %v946_v39  ;;  %v1002_v39 = vld [vmem:[#allocation7 + $0xcf0] sm:$0xff] }
 0x21b   :  { %1311 = vmatprep.subr.mxu0 %v943_v40  ;;  %v1431_v40 = vld [vmem:[#allocation10 + $0xc0] sm:$0xff] }
 0x21c   :  { %1312 = vmatpush2.msra.mxu0 %v942_v41  ;;  %v999_v41 = vld [vmem:[#allocation7 + $0xcd8] sm:$0xff] }
 0x21d   :  { %1313 = vmatprep.subr.mxu0 %v939_v42  ;;  %v1415_v42 = vld [vmem:[#allocation10 + $0x40] sm:$0xff] }
 0x21e   :  { %1314 = vmatpush2.msra.mxu0 %v938_v43  ;;  %v998_v43 = vld [vmem:[#allocation7 + $0xcd0] sm:$0xff] }
 0x21f   :  { %1315 = vmatprep.subr.mxu0 %v935_v44  ;;  %v1430_v44 = vld [vmem:[#allocation10 + $0xb8] sm:$0xff] }
 0x220   :  { %1316 = vmatpush2.msra.mxu0 %v934_v49  ;;  %v995_v49 = vld [vmem:[#allocation7 + $0xcb8] sm:$0xff] }
 0x221   :  { %1317 = vmatprep.subr.mxu0 %v931_v50  ;;  %v1414_v50 = vld [vmem:[#allocation10 + $0x38] sm:$0xff] }
 0x222   :  { %1318 = vmatpush2.msra.mxu0 %v930_v51  ;;  %v994_v51 = vld [vmem:[#allocation7 + $0xcb0] sm:$0xff] }
 0x223   :  { %1319 = vmatprep.subr.mxu0 %v927_v52  ;;  %v1429_v52 = vld [vmem:[#allocation10 + $0xb0] sm:$0xff] }
 0x224   :  { %1320 = vmatpush2.msra.mxu0 %v926_v37  ;;  %v991_v37 = vld [vmem:[#allocation7 + $0xc98] sm:$0xff] }
 0x225   :  { %1321 = vmatprep.subr.mxu0 %v923_v54  ;;  %v1413_v54 = vld [vmem:[#allocation10 + $0x30] sm:$0xff] }
 0x226   :  { %v767_v61 = vpop.f32.mrf.mxu0  ;;  %v838_v62 = vpop.f32.mrf.mxu1  ;;  %1322 = vmatpush2.msra.mxu0 %v922_v55  ;;  %v990_v55 = vld [vmem:[#allocation7 + $0xc90] sm:$0xff] }
 0x227   :  { %1323 = vmatprep.subr.mxu0 %v919_v58  ;;  %v768_v1 = vadd.f32 %v767_v61, %v550_v57  ;;  %v1428_v57 = vld [vmem:[#allocation10 + $0xa8] sm:$0xff]  ;;  %v987_v58 = vld [vmem:[#allocation7 + $0xc78] sm:$0xff]  ;;  %v1427_v61 = vld [vmem:[#allocation10 + $0xa0] sm:$0xff] }
 0x228   :  { %v769_v2 = vpop.f32.mrf.mxu0  ;;  %1324 = vmatpush2.msra.mxu0 %v918_v60  ;;  %v840_v6 = vpop.f32.mrf.mxu1  ;;  %v986_v60 = vld [vmem:[#allocation7 + $0xc70] sm:$0xff] }
 0x229   :  { %v770_v4 = vadd.f32 %v769_v2, %v554_v59  ;;  %1325 = vmatprep.subr.mxu0 %v915_v63  ;;  %v1978_v8 = vadd.f32 %v838_v62, %v768_v1  ;;  %v1412_v59 = vld [vmem:[#allocation10 + $0x28] sm:$0xff]  ;;  %v983_v62 = vld [vmem:[#allocation7 + $0xc58] sm:$0xff]  ;;  %v1411_v63 = vld [vmem:[#allocation10 + $0x20] sm:$0xff] }
 0x22a   :  { %1326 = vmatpush2.msra.mxu0 %v914_v0  ;;  %v982_v0 = vld [vmem:[#allocation7 + $0xc50] sm:$0xff]  ;;  %v1426_v1 = vld [vmem:[#allocation10 + $0x98] sm:$0xff]  ;;  %v979_v2 = vld [vmem:[#allocation7 + $0xc38] sm:$0xff] }
 0x22b   :  { %v841_v7 = vadd.f32 %v840_v6, %v770_v4  ;;  %1327 = vmatprep.subr.mxu0 %v911_v3  ;;  %v1410_v3 = vld [vmem:[#allocation10 + $0x18] sm:$0xff]  ;;  %v978_v4 = vld [vmem:[#allocation7 + $0xc30] sm:$0xff] }
 0x22c   :  { %1328 = vmatpush2.msra.mxu0 %v910_v5  ;;  %v975_v5 = vld [vmem:[#allocation7 + $0xc18] sm:$0xff]  ;;  %v974_v6 = vld [vmem:[#allocation7 + $0xc10] sm:$0xff] }
 0x22d   :  { %1258 = vmatprep.mubr.f32.mxu1 %v841_v7  ;;  %1330 = vmatmul.mubr.f32.vlgmr.msra.gmra.mxu0 %v1967_v56  ;;  %v1436_v56 = vld [vmem:[#allocation10 + $0xe8] sm:$0xff] }
 0x22e   :  { %1259 = vmatmul.mubr.f32.vlgmr.msra.gmra.mxu1 %v1978_v8  ;;  %1640 = vmatprep.subr.mxu0 %v1438_v13  ;;  %v1087_v13 = vld [vmem:[#allocation7 + $0xf98] sm:$0xff] }
 0x22f   :  { %1337 = vmatpush1.msra.mxu1 %v1034_v47  ;;  %1400 = vmatprep.mubr.f32.mxu1 %v841_v7  ;;  %v1099_v7 = vld [vmem:[#allocation7 + $0xff8] sm:$0xff]  ;;  %v1098_v47 = vld [vmem:[#allocation7 + $0xff0] sm:$0xff] }
 0x230   :  { %1338 = vmatprep.subr.mxu1 %v1031_v9  ;;  %1641 = vmatpush3.msra.mxu0 %v1422_v14  ;;  %v1095_v9 = vld [vmem:[#allocation7 + $0xfd8] sm:$0xff]  ;;  %v1086_v14 = vld [vmem:[#allocation7 + $0xf90] sm:$0xff] }
 0x231   :  { %1339 = vmatpush1.msra.mxu1 %v1030_v10  ;;  %1642 = vmatprep.subr.mxu0 %v1437_v15  ;;  %v1094_v10 = vld [vmem:[#allocation7 + $0xfd0] sm:$0xff]  ;;  %v1083_v15 = vld [vmem:[#allocation7 + $0xf78] sm:$0xff] }
 0x232   :  { %1340 = vmatprep.subr.mxu1 %v1027_v11  ;;  %1643 = vmatpush3.msra.mxu0 %v1421_v17  ;;  %v1091_v11 = vld [vmem:[#allocation7 + $0xfb8] sm:$0xff] }
 0x233   :  { %1341 = vmatpush1.msra.mxu1 %v1026_v12  ;;  %1644 = vmatprep.subr.mxu0 %v1436_v56  ;;  %v1090_v12 = vld [vmem:[#allocation7 + $0xfb0] sm:$0xff]  ;;  %v1079_v17 = vld [vmem:[#allocation7 + $0xf58] sm:$0xff] }
 0x234   :  { %1342 = vmatprep.subr.mxu1 %v1023_v16  ;;  %1645 = vmatpush3.msra.mxu0 %v1420_v20  ;;  %v1082_v16 = vld [vmem:[#allocation7 + $0xf70] sm:$0xff]  ;;  %v1075_v56 = vld [vmem:[#allocation7 + $0xf38] sm:$0xff] }
 0x235   :  { %1343 = vmatpush1.msra.mxu1 %v1022_v18  ;;  %1646 = vmatprep.subr.mxu0 %v1435_v22  ;;  %v1078_v18 = vld [vmem:[#allocation7 + $0xf50] sm:$0xff]  ;;  %v1071_v20 = vld [vmem:[#allocation7 + $0xf18] sm:$0xff] }
 0x236   :  { %1344 = vmatprep.subr.mxu1 %v1019_v19  ;;  %1647 = vmatpush3.msra.mxu0 %v1419_v24  ;;  %v1074_v19 = vld [vmem:[#allocation7 + $0xf30] sm:$0xff]  ;;  %v1067_v22 = vld [vmem:[#allocation7 + $0xef8] sm:$0xff] }
 0x237   :  { %1345 = vmatpush1.msra.mxu1 %v1018_v21  ;;  %1648 = vmatprep.subr.mxu0 %v1434_v26  ;;  %v1070_v21 = vld [vmem:[#allocation7 + $0xf10] sm:$0xff]  ;;  %v1063_v24 = vld [vmem:[#allocation7 + $0xed8] sm:$0xff] }
 0x238   :  { %1346 = vmatprep.subr.mxu1 %v1015_v23  ;;  %1649 = vmatpush3.msra.mxu0 %v1418_v28  ;;  %v1066_v23 = vld [vmem:[#allocation7 + $0xef0] sm:$0xff]  ;;  %v1059_v26 = vld [vmem:[#allocation7 + $0xeb8] sm:$0xff] }
 0x239   :  { %1347 = vmatpush1.msra.mxu1 %v1014_v25  ;;  %1650 = vmatprep.subr.mxu0 %v1433_v30  ;;  %v1062_v25 = vld [vmem:[#allocation7 + $0xed0] sm:$0xff]  ;;  %v1055_v28 = vld [vmem:[#allocation7 + $0xe98] sm:$0xff] }
 0x23a   :  { %1348 = vmatprep.subr.mxu1 %v1011_v27  ;;  %1651 = vmatpush3.msra.mxu0 %v1417_v32  ;;  %v1058_v27 = vld [vmem:[#allocation7 + $0xeb0] sm:$0xff]  ;;  %v1051_v30 = vld [vmem:[#allocation7 + $0xe78] sm:$0xff] }
 0x23b   :  { %1349 = vmatpush1.msra.mxu1 %v1010_v29  ;;  %1652 = vmatprep.subr.mxu0 %v1432_v34  ;;  %v1054_v29 = vld [vmem:[#allocation7 + $0xe90] sm:$0xff]  ;;  %v1047_v32 = vld [vmem:[#allocation7 + $0xe58] sm:$0xff] }
 0x23c   :  { %1350 = vmatprep.subr.mxu1 %v1007_v31  ;;  %1653 = vmatpush3.msra.mxu0 %v1416_v38  ;;  %v1050_v31 = vld [vmem:[#allocation7 + $0xe70] sm:$0xff]  ;;  %v1043_v34 = vld [vmem:[#allocation7 + $0xe38] sm:$0xff] }
 0x23d   :  { %1351 = vmatpush1.msra.mxu1 %v1006_v33  ;;  %1654 = vmatprep.subr.mxu0 %v1431_v40  ;;  %v1046_v33 = vld [vmem:[#allocation7 + $0xe50] sm:$0xff]  ;;  %v1039_v38 = vld [vmem:[#allocation7 + $0xe18] sm:$0xff] }
 0x23e   :  { %1352 = vmatprep.subr.mxu1 %v1003_v35  ;;  %1655 = vmatpush3.msra.mxu0 %v1415_v42  ;;  %v1042_v35 = vld [vmem:[#allocation7 + $0xe30] sm:$0xff]  ;;  %v1425_v40 = vld [vmem:[#allocation10 + $0x90] sm:$0xff] }
 0x23f   :  { %1353 = vmatpush1.msra.mxu1 %v1002_v39  ;;  %1656 = vmatprep.subr.mxu0 %v1430_v44  ;;  %v1038_v39 = vld [vmem:[#allocation7 + $0xe10] sm:$0xff]  ;;  %v1423_v44 = vld [vmem:[#allocation10 + $0x80] sm:$0xff] }
 0x240   :  { %1354 = vmatprep.subr.mxu1 %v999_v41  ;;  %1657 = vmatpush3.msra.mxu0 %v1414_v50  ;;  %v1409_v41 = vld [vmem:[#allocation10 + $0x10] sm:$0xff]  ;;  %v1424_v42 = vld [vmem:[#allocation10 + $0x88] sm:$0xff]  ;;  %v1470_v50 = vld [vmem:[#allocation10 + $0x1f8] sm:$0xff] }
 0x241   :  { %1355 = vmatpush1.msra.mxu1 %v998_v43  ;;  %1658 = vmatprep.subr.mxu0 %v1429_v52  ;;  %v1408_v43 = vld [vmem:[#allocation10 + $0x8] sm:$0xff]  ;;  %v1469_v52 = vld [vmem:[#allocation10 + $0x1f0] sm:$0xff] }
 0x242   :  { %1356 = vmatprep.subr.mxu1 %v995_v49  ;;  %1659 = vmatpush3.msra.mxu0 %v1413_v54  ;;  %v1407_v49 = vld [vmem:[#allocation10] sm:$0xff]  ;;  %v1468_v54 = vld [vmem:[#allocation10 + $0x1e8] sm:$0xff] }
 0x243   :  { %1357 = vmatpush1.msra.mxu1 %v994_v51  ;;  %1660 = vmatprep.subr.mxu0 %v1428_v57  ;;  %v1454_v51 = vld [vmem:[#allocation10 + $0x178] sm:$0xff]  ;;  %v1451_v57 = vld [vmem:[#allocation10 + $0x160] sm:$0xff] }
 0x244   :  { %1358 = vmatprep.subr.mxu1 %v991_v37  ;;  %1661 = vmatpush3.msra.mxu0 %v1412_v59  ;;  %v1453_v37 = vld [vmem:[#allocation10 + $0x170] sm:$0xff]  ;;  %v1450_v59 = vld [vmem:[#allocation10 + $0x158] sm:$0xff] }
 0x245   :  { %1359 = vmatpush1.msra.mxu1 %v990_v55  ;;  %1662 = vmatprep.subr.mxu0 %v1427_v61  ;;  %v1467_v55 = vld [vmem:[#allocation10 + $0x1e0] sm:$0xff]  ;;  %v1449_v61 = vld [vmem:[#allocation10 + $0x150] sm:$0xff] }
 0x246   :  { %1360 = vmatprep.subr.mxu1 %v987_v58  ;;  %1663 = vmatpush3.msra.mxu0 %v1411_v63  ;;  %v1466_v58 = vld [vmem:[#allocation10 + $0x1d8] sm:$0xff]  ;;  %v1448_v63 = vld [vmem:[#allocation10 + $0x148] sm:$0xff] }
 0x247   :  { %1361 = vmatpush1.msra.mxu1 %v986_v60  ;;  %1664 = vmatprep.subr.mxu0 %v1426_v1  ;;  %v1465_v60 = vld [vmem:[#allocation10 + $0x1d0] sm:$0xff]  ;;  %v1447_v1 = vld [vmem:[#allocation10 + $0x140] sm:$0xff] }
 0x248   :  { %1362 = vmatprep.subr.mxu1 %v983_v62  ;;  %1665 = vmatpush3.msra.mxu0 %v1410_v3  ;;  %v1464_v62 = vld [vmem:[#allocation10 + $0x1c8] sm:$0xff]  ;;  %v1446_v3 = vld [vmem:[#allocation10 + $0x138] sm:$0xff] }
 0x249   :  { %1363 = vmatpush1.msra.mxu1 %v982_v0  ;;  %1666 = vmatprep.subr.mxu0 %v1425_v40  ;;  %v1463_v0 = vld [vmem:[#allocation10 + $0x1c0] sm:$0xff] }
 0x24a   :  { %1364 = vmatprep.subr.mxu1 %v979_v2  ;;  %1667 = vmatpush3.msra.mxu0 %v1409_v41  ;;  %v1462_v2 = vld [vmem:[#allocation10 + $0x1b8] sm:$0xff]  ;;  %v1639_v41 = vld [vmem:[#allocation11] ss:$0 sm:$0xff] }
 0x24b   :  { %1365 = vmatpush1.msra.mxu1 %v978_v4  ;;  %1668 = vmatprep.subr.mxu0 %v1424_v42  ;;  %v1461_v4 = vld [vmem:[#allocation10 + $0x1b0] sm:$0xff] }
 0x24c   :  { %1366 = vmatprep.subr.mxu1 %v975_v5  ;;  %1669 = vmatpush3.msra.mxu0 %v1408_v43  ;;  %v1445_v5 = vld [vmem:[#allocation10 + $0x130] sm:$0xff] }
 0x24d   :  { %1367 = vmatpush1.msra.mxu1 %v974_v6  ;;  %1670 = vmatprep.subr.mxu0 %v1423_v44  ;;  %v1460_v6 = vld [vmem:[#allocation10 + $0x1a8] sm:$0xff] }
 0x24e   :  { %1368 = vmatprep.subr.mxu1 %v1099_v7  ;;  %1671 = vmatpush3.msra.mxu0 %v1407_v49  ;;  %v1444_v7 = vld [vmem:[#allocation10 + $0x128] sm:$0xff] }
 0x24f   :  { %1369 = vmatpush2.msra.mxu1 %v1098_v47  ;;  %v1459_v47 = vld [vmem:[#allocation10 + $0x1a0] sm:$0xff] }
 0x250   :  { %1370 = vmatprep.subr.mxu1 %v1095_v9  ;;  %v1443_v9 = vld [vmem:[#allocation10 + $0x120] sm:$0xff] }
 0x251   :  { %1371 = vmatpush2.msra.mxu1 %v1094_v10  ;;  %v1458_v10 = vld [vmem:[#allocation10 + $0x198] sm:$0xff] }
 0x252   :  { %1372 = vmatprep.subr.mxu1 %v1091_v11  ;;  %v1442_v11 = vld [vmem:[#allocation10 + $0x118] sm:$0xff] }
 0x253   :  { %1373 = vmatpush2.msra.mxu1 %v1090_v12  ;;  %v1457_v12 = vld [vmem:[#allocation10 + $0x190] sm:$0xff] }
 0x254   :  { %1374 = vmatprep.subr.mxu1 %v1087_v13  ;;  %v1441_v13 = vld [vmem:[#allocation10 + $0x110] sm:$0xff] }
 0x255   :  { %1375 = vmatpush2.msra.mxu1 %v1086_v14  ;;  %v1456_v14 = vld [vmem:[#allocation10 + $0x188] sm:$0xff] }
 0x256   :  { %1376 = vmatprep.subr.mxu1 %v1083_v15  ;;  %v1440_v15 = vld [vmem:[#allocation10 + $0x108] sm:$0xff] }
 0x257   :  { %1377 = vmatpush2.msra.mxu1 %v1082_v16  ;;  %v1455_v16 = vld [vmem:[#allocation10 + $0x180] sm:$0xff] }
 0x258   :  { %1378 = vmatprep.subr.mxu1 %v1079_v17  ;;  %v1439_v17 = vld [vmem:[#allocation10 + $0x100] sm:$0xff] }
 0x259   :  { %1379 = vmatpush2.msra.mxu1 %v1078_v18 }
 0x25a   :  { %1380 = vmatprep.subr.mxu1 %v1075_v56  ;;  %v1101_v56 = vld [vmem:[#allocation8 + $0x4] sm:$0xf] }
 0x25b   :  { %1381 = vmatpush2.msra.mxu1 %v1074_v19  ;;  %v1110_v19 = vrot.slane %v1101_v56, %v545_v48 }
 0x25c   :  { %1382 = vmatprep.subr.mxu1 %v1071_v20  ;;  %v1106_v20 = vrot.slane %v1101_v56, %v541_v46 }
 0x25d   :  { %1383 = vmatpush2.msra.mxu1 %v1070_v21 }
 0x25e   :  { %1384 = vmatprep.subr.mxu1 %v1067_v22 }
 0x25f   :  { %1385 = vmatpush2.msra.mxu1 %v1066_v23 }
 0x260   :  { %1386 = vmatprep.subr.mxu1 %v1063_v24 }
 0x261   :  { %1387 = vmatpush2.msra.mxu1 %v1062_v25 }
 0x262   :  { %1388 = vmatprep.subr.mxu1 %v1059_v26 }
 0x263   :  { %1389 = vmatpush2.msra.mxu1 %v1058_v27 }
 0x264   :  { %1390 = vmatprep.subr.mxu1 %v1055_v28 }
 0x265   :  { %1391 = vmatpush2.msra.mxu1 %v1054_v29  ;;  %v1118_v29 = vrot.slane %v1101_v56, %v553_v53 }
 0x266   :  { %1392 = vmatprep.subr.mxu1 %v1051_v30  ;;  %v1114_v30 = vrot.slane %v1101_v56, %v549_v36 }
 0x267   :  { %1393 = vmatpush2.msra.mxu1 %v1050_v31 }
 0x268   :  { %1394 = vmatprep.subr.mxu1 %v1047_v32 }
 0x269   :  { %1395 = vmatpush2.msra.mxu1 %v1046_v33 }
 0x26a   :  { %1396 = vmatprep.subr.mxu1 %v1043_v34 }
 0x26b   :  { %1397 = vmatpush2.msra.mxu1 %v1042_v35 }
 0x26c   :  { %1398 = vmatprep.subr.mxu1 %v1039_v38 }
 0x26d   :  { %1399 = vmatpush2.msra.mxu1 %v1038_v39 }
 0x26e   :  { %1401 = vmatmul.mubr.f32.vlgmr.msra.gmra.mxu1 %v1978_v8  ;;  %1675 = vmatprep.subr.mxu1 %v1470_v50  ;;  %v1452_v8 = vld [vmem:[#allocation10 + $0x168] sm:$0xff] }
 0x26f   :  { %1676 = vmatpush3.msra.mxu1 %v1454_v51 }
 0x270   :  { %1677 = vmatprep.subr.mxu1 %v1469_v52 }
 0x271   :  { %1678 = vmatpush3.msra.mxu1 %v1453_v37 }
 0x272   :  { %1679 = vmatprep.subr.mxu1 %v1468_v54 }
 0x273   :  { %1680 = vmatpush3.msra.mxu1 %v1452_v8 }
 0x274   :  { %1681 = vmatprep.subr.mxu1 %v1467_v55 }
 0x275   :  { %1682 = vmatpush3.msra.mxu1 %v1451_v57 }
 0x276   :  { %1683 = vmatprep.subr.mxu1 %v1466_v58 }
 0x277   :  { %1684 = vmatpush3.msra.mxu1 %v1450_v59 }
 0x278   :  { %1685 = vmatprep.subr.mxu1 %v1465_v60 }
 0x279   :  { %1686 = vmatpush3.msra.mxu1 %v1449_v61 }
 0x27a   :  { %1687 = vmatprep.subr.mxu1 %v1464_v62 }
 0x27b   :  { %1688 = vmatpush3.msra.mxu1 %v1448_v63 }
 0x27c   :  { %1689 = vmatprep.subr.mxu1 %v1463_v0 }
 0x27d   :  { %1690 = vmatpush3.msra.mxu1 %v1447_v1 }
 0x27e   :  { %1691 = vmatprep.subr.mxu1 %v1462_v2 }
 0x27f   :  { %1692 = vmatpush3.msra.mxu1 %v1446_v3 }
 0x280   :  { %1693 = vmatprep.subr.mxu1 %v1461_v4 }
 0x281   :  { %1694 = vmatpush3.msra.mxu1 %v1445_v5 }
 0x282   :  { %1695 = vmatprep.subr.mxu1 %v1460_v6 }
 0x283   :  { %1696 = vmatpush3.msra.mxu1 %v1444_v7 }
 0x284   :  { %1697 = vmatprep.subr.mxu1 %v1459_v47 }
 0x285   :  { %1698 = vmatpush3.msra.mxu1 %v1443_v9 }
 0x286   :  { %1699 = vmatprep.subr.mxu1 %v1458_v10 }
 0x287   :  { %1700 = vmatpush3.msra.mxu1 %v1442_v11 }
 0x288   :  { %1701 = vmatprep.subr.mxu1 %v1457_v12 }
 0x289   :  { %1702 = vmatpush3.msra.mxu1 %v1441_v13 }
 0x28a   :  { %1703 = vmatprep.subr.mxu1 %v1456_v14 }
 0x28b   :  { %1704 = vmatpush3.msra.mxu1 %v1440_v15 }
 0x28c   :  { %1705 = vmatprep.subr.mxu1 %v1455_v16 }
 0x28d   :  { %1706 = vmatpush3.msra.mxu1 %v1439_v17 }
 0x2ad   :  { %v1189_v18 = vpop.f32.mrf.mxu0 }
 0x2ae   :  { %v1190_v24 = vadd.f32 %v1189_v18, %v1106_v20 }
 0x2af   :  { %v1191_v21 = vpop.f32.mrf.mxu0 }
 0x2b0   :  { %v1192_v23 = vadd.f32 %v1191_v21, %v1110_v19 }
 0x2ed   :  { %v1331_v28 = vpop.f32.mrf.mxu0 }
 0x2ee   :  { %v1260_v22 = vpop.f32.mrf.mxu1  ;;  %v1332_v46 = vadd.f32 %v1331_v28, %v1114_v30 }
 0x2ef   :  { %v1261_v27 = vadd.f32 %v1260_v22, %v1190_v24  ;;  %v1333_v48 = vpop.f32.mrf.mxu0 }
 0x2f0   :  { %v1262_v25 = vpop.f32.mrf.mxu1  ;;  %v1334_v32 = vadd.f32 %v1333_v48, %v1118_v29 }
 0x2f1   :  { %v1263_v26 = vadd.f32 %v1262_v25, %v1192_v23 }
 0x2f3   :  { %1542 = vmatprep.mubr.f32.mxu0 %v1263_v26 }
 0x2f4   :  { %1543 = vmatmul.mubr.f32.vlgmr.msra.gmra.mxu0 %v1261_v27 }
 0x32e   :  { %v1402_v31 = vpop.f32.mrf.mxu1 }
 0x32f   :  { %v1403_v35 = vadd.f32 %v1402_v31, %v1332_v46 }
 0x330   :  { %v1404_v33 = vpop.f32.mrf.mxu1 }
 0x331   :  { %v1405_v34 = vadd.f32 %v1404_v33, %v1334_v32 }
 0x333   :  { %1612 = vmatprep.mubr.f32.mxu1 %v1405_v34 }
 0x334   :  { %1613 = vmatmul.mubr.f32.vlgmr.msra.gmra.mxu1 %v1403_v35 }
 0x3b4   :  { %v1672_v38 = vpop.f32.mrf.mxu0 }
 0x3b6   :  { %v1673_v39 = vpop.f32.mrf.mxu0 }
 0x3b7   :  { %v1674_v40 = vadd.f32 %v1673_v39, %v1672_v38 }
 0x3b9   :  { %v1545_v53 = vadd.f32 %v1674_v40, %v1639_v41 }
 0x3f4   :  { %v1707_v42 = vpop.f32.mrf.mxu1 }
 0x3f6   :  { %v1708_v43 = vpop.f32.mrf.mxu1 }
 0x3f7   :  { %v1709_v45 = vadd.f32 %v1708_v43, %v1707_v42 }
 0x3f9   :  { %v1615_v36 = vadd.f32 %v1709_v45, %v1545_v53 }
 0x3fb   :  { %1618 = vst [vmem:[#allocation13] sm:$0x3] %v1615_v36 }
 0x3fc   :  { %1855 = shalt.err (!%p1852_p6)
}
 0x3fd   :  { %1628 = dma.vmem_to_hbm [thread:$0]  %s1626_s5, 32, %s2000_s6, [#allocation4]  }
 0x3fe   :  { %1872 = dma.done.wait [#allocation4], 32  }
 0x3ff   :  { %1873 = vsyncadd [#allocation4], 4294967264 }
 0x400   :  { %1632 = vsyncpa [#allocation3], 1 }
 0x401   :  { %1633 = vsyncpa [#allocation6], 1 }
 0x402   :  { %1634 = vsyncpa [#allocation9], 1 }
 0x403   :  { %1635 = vsyncpa [#allocation12], 1 }
 0x404   :  { %1636 = vsyncpa [#allocation4], 1 }

</bundles_post_ra>
